<compile_context>
chip_gen: v6e
topology: v6e:2x2x1
jax: 0.10.0
libtpu: 0.0.40
codegen_flags: <defaults>
</compile_context>

<pallas_src>
import functools

import jax
import jax.numpy as jnp
from jax.experimental import pallas as pl
from jax.experimental.pallas import tpu as pltpu

IN_FEATS = 16
OUT_FEATS = 5
NUM_HEADS = 4
N_NODES = 128
F_PAD = 8   # per-head feature block padded to 8 (sublane alignment)
H_PAD = 8   # el / er logit blocks padded to 8 rows (sublane alignment)


def _gat_kernel(wt_ref, featT_ref, adj_ref, out_ref, *, num_heads, f_pad, h_pad):
    H, Fp = num_heads, f_pad
    HFp = H * Fp

    wt = wt_ref[...]        # (HFp + 2*h_pad, Din)  fused [W_pad | W_el | W_er]^T
    featT = featT_ref[...]  # (Din, N)              node features, lane dim = nodes
    adj = adj_ref[...]      # (N, N) int8           adj[s, t] != 0  iff edge s -> t

    # --- ONE fused MXU projection: h^T, el^T, er^T, all lane-dense over nodes ---
    hcatT = jnp.dot(wt, featT, preferred_element_type=jnp.float32)  # (HFp+2*h_pad, N)
    hT = hcatT[:HFp, :]                                # (HFp, N)  per-head features
    elT = hcatT[HFp:HFp + H, :]                        # (H, N)    source logits
    erT = hcatT[HFp + h_pad:HFp + h_pad + H, :]        # (H, N)    target logits

    # scores s[h, src, trg] = el[src, h] + er[trg, h]   (lanes = targets)
    s = elT[:, :, None] + erT[:, None, :]              # (H, N, N)
    s = jnp.maximum(s, 0.2 * s)                        # LeakyReLU(0.2)

    mask = adj != 0                                    # (N, N)  src x trg
    s = jnp.where(mask[None, :, :], s, jnp.float32(-1e30))

    # Neighborhood softmax over sources (sublane reduction).  Masked entries
    # underflow exp() to exactly 0.  Each target needs >= 1 in-edge (self-loops),
    # as in standard GAT usage; per-column max shift is identical to the
    # reference's global-max shift.
    m = jnp.max(s, axis=1, keepdims=True)              # (H, 1, N)
    p = jnp.exp(s - m)                                 # (H, N, N)
    denom = jnp.sum(p, axis=1, keepdims=True)          # (H, 1, N)
    attn = p * pl.reciprocal(denom + 1e-16, approx=True)

    # Head-batched MXU aggregation, lane-dense output:
    #   out[h, f, t] = sum_s hT[h, f, s] * attn[h, s, t]
    hT_heads = hT.reshape(H, Fp, hT.shape[-1])         # free, 8-sublane-aligned reshape
    out_ref[...] = jax.lax.dot_general(
        hT_heads, attn,
        dimension_numbers=(((2,), (1,)), ((0,), (0,))),
        preferred_element_type=jnp.float32)            # (H, Fp, N)


def sparse_gat_conv(feat, W, attn_l, attn_r, adj_st_i8, *, num_heads, out_feats):
    """feat: (N, Din) f32; W: (Din, H*F); attn_l/attn_r: (H, F);
    adj_st_i8: (N, N) int8 with adj[s, t] != 0 iff edge s -> t."""
    n, din = feat.shape
    H, F = num_heads, out_feats
    Fp, Hp = F_PAD, H_PAD
    assert F <= Fp and H <= Hp

    # Parameter-only prep (wrapper-side, done once):
    #  * fold attn_l / attn_r reductions into the projection weight,
    #  * zero-pad per-head blocks to 8 so in-kernel slices/reshapes are aligned,
    #  * transpose so the kernel matmul output is lane-dense over nodes.
    w3 = W.reshape(din, H, F)
    w_pad = jnp.zeros((din, H, Fp), W.dtype).at[:, :, :F].set(w3)      # (Din, H, Fp)
    w_el = jnp.einsum('dhf,hf->dh', w3, attn_l)                        # (Din, H)
    w_er = jnp.einsum('dhf,hf->dh', w3, attn_r)                        # (Din, H)
    w_el_pad = jnp.zeros((din, Hp), W.dtype).at[:, :H].set(w_el)
    w_er_pad = jnp.zeros((din, Hp), W.dtype).at[:, :H].set(w_er)
    w_fused_t = jnp.concatenate(
        [w_pad.reshape(din, H * Fp), w_el_pad, w_er_pad], axis=1).T    # (H*Fp+2*Hp, Din)
    feat_t = feat.T                                                    # (Din, N)

    rows = H * Fp + 2 * Hp
    kernel = functools.partial(_gat_kernel, num_heads=H, f_pad=Fp, h_pad=Hp)

    out_hft = pl.pallas_call(
        kernel,
        out_shape=jax.ShapeDtypeStruct((H, Fp, n), jnp.float32),
        grid=(1,),
        in_specs=[
            pl.BlockSpec((rows, din), lambda i: (0, 0)),      # fused weights
            pl.BlockSpec((din, n), lambda i: (0, 0)),         # feat^T
            pl.BlockSpec((n, n), lambda i: (0, 0)),           # adjacency (int8)
        ],
        out_specs=pl.BlockSpec((H, Fp, n), lambda i: (0, 0, 0)),
        compiler_params=pltpu.CompilerParams(
            dimension_semantics=("arbitrary",)),
    )(w_fused_t, feat_t, adj_st_i8)

    # (H, Fp, N) -> drop F padding -> (N, H*F) == h_prime.view(N, -1)
    return out_hft[:, :F, :].transpose(2, 0, 1).reshape(n, H * F)


def _reference(feat, W, attn_l, attn_r, src, trg, n, num_heads, out_feats):
    """Pure-JAX edge-list reference (eval-mode, intended GAT aggregation)."""
    h = (feat @ W).reshape(n, num_heads, out_feats)
    el = jnp.sum(h * attn_l.reshape(1, num_heads, out_feats), axis=-1)   # (N, H)
    er = jnp.sum(h * attn_r.reshape(1, num_heads, out_feats), axis=-1)   # (N, H)
    s = el[src] + er[trg]                                                # (E, H)
    s = jnp.where(s > 0, s, 0.2 * s)
    s = s - jnp.max(s)                                                   # global max (as in torch)
    e = jnp.exp(s)
    denom = jax.ops.segment_sum(e, trg, num_segments=n)                  # (N, H)
    attn = e / (denom[trg] + 1e-16)                                      # (E, H)
    msg = h[src] * attn[:, :, None]                                      # (E, H, F)
    hp = jax.ops.segment_sum(msg, trg, num_segments=n)                   # (N, H, F)
    return hp.reshape(n, -1)


if __name__ == "__main__":
    key = jax.random.PRNGKey(0)
    k_w, k_al, k_ar, k_feat, k_adj = jax.random.split(key, 5)

    # Deterministic xavier-uniform style init.
    b_w = (6.0 / (IN_FEATS + NUM_HEADS * OUT_FEATS)) ** 0.5
    W = jax.random.uniform(k_w, (IN_FEATS, NUM_HEADS * OUT_FEATS),
                           jnp.float32, -b_w, b_w)
    b_a = (6.0 / (NUM_HEADS * OUT_FEATS + OUT_FEATS)) ** 0.5
    attn_l = jax.random.uniform(k_al, (NUM_HEADS, OUT_FEATS), jnp.float32, -b_a, b_a)
    attn_r = jax.random.uniform(k_ar, (NUM_HEADS, OUT_FEATS), jnp.float32, -b_a, b_a)

    feat = jax.random.normal(k_feat, (N_NODES, IN_FEATS), jnp.float32)

    # adj[s, t] = 1 iff edge s -> t (src dim 0, trg dim 1), with self-loops so every
    # target has at least one in-neighbor (standard GAT usage).
    adj = (jax.random.bernoulli(k_adj, 0.06, (N_NODES, N_NODES))
           | jnp.eye(N_NODES, dtype=bool))
    adj_st_i8 = adj.astype(jnp.int8)          # kernel layout: rows = source, int8

    out = sparse_gat_conv(feat, W, attn_l, attn_r, adj_st_i8,
                          num_heads=NUM_HEADS, out_feats=OUT_FEATS)
    out = jax.block_until_ready(out)

    src, trg = jnp.nonzero(adj)
    ref = _reference(feat, W, attn_l, attn_r, src, trg,
                     N_NODES, NUM_HEADS, OUT_FEATS)
    assert out.shape == (N_NODES, NUM_HEADS * OUT_FEATS)
    # Per-target (vs global) softmax shift and the EUP approximate reciprocal give
    # ~1e-4 relative deviation from the exact f32 path.
    assert jnp.allclose(out, ref, atol=2e-3, rtol=2e-3), float(
        jnp.max(jnp.abs(out - ref)))

    print("KERNEL_OK")
</pallas_src>

<mosaic_0001>
module attributes {stable_mosaic.version = 11 : i64} {
  func.func @_gat_kernel(%arg0: i32, %arg1: memref<48x16xf32, #tpu.memory_space<vmem>>, %arg2: memref<16x128xf32, #tpu.memory_space<vmem>>, %arg3: memref<128x128xi8, #tpu.memory_space<vmem>>, %arg4: memref<4x8x128xf32, #tpu.memory_space<vmem>>) attributes {dimension_semantics = [#tpu.dimension_semantics<arbitrary>], iteration_bounds = array<i64: 1>, scalar_prefetch = 0 : i64, scratch_operands = 0 : i64, tpu.core_type = #tpu.core_type<tc>, window_params = [{pipeline_mode = #tpu.pipeline_mode<synchronous>, transform_indices = @transform_0, window_bounds = array<i64: 48, 16>}, {pipeline_mode = #tpu.pipeline_mode<synchronous>, transform_indices = @transform_1, window_bounds = array<i64: 16, 128>}, {pipeline_mode = #tpu.pipeline_mode<synchronous>, transform_indices = @transform_2, window_bounds = array<i64: 128, 128>}, {pipeline_mode = #tpu.pipeline_mode<synchronous>, transform_indices = @transform_3, window_bounds = array<i64: 4, 8, 128>}]} {
    %c0 = arith.constant 0 : index
    %c0_0 = arith.constant 0 : index
    %0 = vector.load %arg1[%c0, %c0_0] : memref<48x16xf32, #tpu.memory_space<vmem>>, vector<48x16xf32>
    %c0_1 = arith.constant 0 : index
    %c0_2 = arith.constant 0 : index
    %1 = vector.load %arg2[%c0_1, %c0_2] : memref<16x128xf32, #tpu.memory_space<vmem>>, vector<16x128xf32>
    %c0_3 = arith.constant 0 : index
    %c0_4 = arith.constant 0 : index
    %2 = vector.load %arg3[%c0_3, %c0_4] : memref<128x128xi8, #tpu.memory_space<vmem>>, vector<128x128xi8>
    %cst = arith.constant dense<0.000000e+00> : vector<48x128xf32>
    %3 = tpu.matmul %0, %1, %cst {dimension_numbers = #tpu.dot_dimension_numbers<[1], [0], [0], [1], [0, 0, 1, 1], [], []>} : vector<48x16xf32>, vector<16x128xf32>, vector<48x128xf32> -> vector<48x128xf32>
    %4 = vector.extract_strided_slice %3 {offsets = [0, 0], sizes = [32, 128], strides = [1, 1]} : vector<48x128xf32> to vector<32x128xf32>
    %5 = vector.extract_strided_slice %3 {offsets = [32, 0], sizes = [4, 128], strides = [1, 1]} : vector<48x128xf32> to vector<4x128xf32>
    %6 = vector.extract_strided_slice %3 {offsets = [40, 0], sizes = [4, 128], strides = [1, 1]} : vector<48x128xf32> to vector<4x128xf32>
    %7 = vector.shape_cast %5 : vector<4x128xf32> to vector<4x128x1xf32>
    %8 = vector.shape_cast %6 : vector<4x128xf32> to vector<4x1x128xf32>
    %9 = vector.broadcast %7 : vector<4x128x1xf32> to vector<4x128x128xf32>
    %10 = vector.broadcast %8 : vector<4x1x128xf32> to vector<4x128x128xf32>
    %11 = arith.addf %9, %10 : vector<4x128x128xf32>
    %cst_5 = arith.constant 2.000000e-01 : f32
    %12 = vector.broadcast %cst_5 : f32 to vector<4x128x128xf32>
    %13 = arith.mulf %12, %11 : vector<4x128x128xf32>
    %14 = arith.maximumf %11, %13 : vector<4x128x128xf32>
    %c0_i8 = arith.constant 0 : i8
    %15 = vector.broadcast %c0_i8 : i8 to vector<128x128xi8>
    %16 = arith.cmpi ne, %2, %15 : vector<128x128xi8>
    %17 = vector.shape_cast %16 : vector<128x128xi1> to vector<1x128x128xi1>
    %cst_6 = arith.constant -1.000000e+30 : f32
    %18 = vector.shape_cast %17 : vector<1x128x128xi1> to vector<1x128x128xi1>
    %19 = vector.broadcast %18 : vector<1x128x128xi1> to vector<4x128x128xi1>
    %20 = vector.broadcast %cst_6 : f32 to vector<4x128x128xf32>
    %21 = arith.select %19, %14, %20 : vector<4x128x128xi1>, vector<4x128x128xf32>
    %cst_7 = arith.constant dense<0xFF800000> : vector<4x128xf32>
    %22 = vector.multi_reduction <maximumf>, %21, %cst_7 [1] : vector<4x128x128xf32> to vector<4x128xf32>
    %23 = vector.shape_cast %22 : vector<4x128xf32> to vector<4x1x128xf32>
    %24 = vector.broadcast %23 : vector<4x1x128xf32> to vector<4x128x128xf32>
    %25 = arith.subf %21, %24 : vector<4x128x128xf32>
    %26 = math.exp %25 : vector<4x128x128xf32>
    %cst_8 = arith.constant dense<0.000000e+00> : vector<4x128xf32>
    %27 = vector.multi_reduction <add>, %26, %cst_8 [1] : vector<4x128x128xf32> to vector<4x128xf32>
    %28 = vector.shape_cast %27 : vector<4x128xf32> to vector<4x1x128xf32>
    %cst_9 = arith.constant 1.000000e-16 : f32
    %29 = vector.broadcast %cst_9 : f32 to vector<4x1x128xf32>
    %30 = arith.addf %28, %29 : vector<4x1x128xf32>
    %31 = tpu.reciprocal %30 {approx = true} : vector<4x1x128xf32> -> vector<4x1x128xf32>
    %32 = vector.broadcast %31 : vector<4x1x128xf32> to vector<4x128x128xf32>
    %33 = arith.mulf %26, %32 : vector<4x128x128xf32>
    %34 = vector.shape_cast %4 : vector<32x128xf32> to vector<4x8x128xf32>
    %cst_10 = arith.constant dense<0.000000e+00> : vector<4x8x128xf32>
    %35 = tpu.matmul %34, %33, %cst_10 {dimension_numbers = #tpu.dot_dimension_numbers<[2], [1], [1], [2], [0, 0, 0, 1, 1, 2], [0], [0]>} : vector<4x8x128xf32>, vector<4x128x128xf32>, vector<4x8x128xf32> -> vector<4x8x128xf32>
    %c0_11 = arith.constant 0 : index
    %c0_12 = arith.constant 0 : index
    %c0_13 = arith.constant 0 : index
    %36 = vector.load %arg4[%c0_11, %c0_12, %c0_13] : memref<4x8x128xf32, #tpu.memory_space<vmem>>, vector<4x8x128xf32>
    tpu.vector_store %arg4[%c0_11, %c0_12, %c0_13], %35 {strides = array<i32>} : memref<4x8x128xf32, #tpu.memory_space<vmem>>, vector<4x8x128xf32>,
    return
  }
  func.func @transform_0(%arg0: i32) -> (i32, i32) {
    %c0_i32 = arith.constant 0 : i32
    %c0_i32_0 = arith.constant 0 : i32
    %c0_i32_1 = arith.constant 0 : i32
    return %c0_i32, %c0_i32_0 : i32, i32
  }
  func.func @transform_1(%arg0: i32) -> (i32, i32) {
    %c0_i32 = arith.constant 0 : i32
    %c0_i32_0 = arith.constant 0 : i32
    %c0_i32_1 = arith.constant 0 : i32
    return %c0_i32, %c0_i32_0 : i32, i32
  }
  func.func @transform_2(%arg0: i32) -> (i32, i32) {
    %c0_i32 = arith.constant 0 : i32
    %c0_i32_0 = arith.constant 0 : i32
    %c0_i32_1 = arith.constant 0 : i32
    return %c0_i32, %c0_i32_0 : i32, i32
  }
  func.func @transform_3(%arg0: i32) -> (i32, i32, i32) {
    %c0_i32 = arith.constant 0 : i32
    %c0_i32_0 = arith.constant 0 : i32
    %c0_i32_1 = arith.constant 0 : i32
    %c0_i32_2 = arith.constant 0 : i32
    return %c0_i32, %c0_i32_0, %c0_i32_1 : i32, i32, i32
  }
}

</mosaic_0001>

<bundles_post_ra>
// kernel: tpu_custom_call.1
= control target key start
LH: loop header
LB: loop body
LE: loop exit
PB: predicated region body
PF: predicated region fallthrough
CT: control target
= control target key end

     0   :  { %vm29_vm0 = vcmask 130048   ;;  %s3336_s0 = inlined_call_operand.vmem [shape: f32[48,16], index: 0, kind: input, shape index: {}]   ;;  %s3337_s1 = inlined_call_operand.vmem [shape: f32[16,128], index: 1, kind: input, shape index: {}]   ;;  %s3338_s2 = inlined_call_operand.vmem [shape: s8[128,128], index: 2, kind: input, shape index: {}]   ;;  %s3339_s3 = inlined_call_operand.hbm [shape: f32[4,8,128], index: 3, kind: output, shape index: {}]  }
   0x1   :  { %v24_v0 = vld [vmem:[%s3337_s1 + $0x8] sm:$0xff]  ;;  %v23_v1 = vld [vmem:[%s3337_s1] sm:$0xff] }
   0x2   :  { %v17_v2 = vld [vmem:[%s3336_s0] sm:$0xff]  ;;  %1678 = vmatprep.subr.mxu0 %v24_v0  ;;  %v18_v3 = vld [vmem:[%s3336_s0 + $0x8] sm:$0xff] }
   0x3   :  { %1682 = vmatprep.mubr.msk.f32.mxu0 %vm29_vm0, %v17_v2  ;;  %1679 = vmatpush3.msra.mxu0 %v24_v0 }
   0x4   :  { %8 = vsyncpa [#allocation3], 0  ;;  %1680 = vmatprep.subr.mxu0 %v23_v1  ;;  %v19_v4 = vld [vmem:[%s3336_s0 + $0x10] sm:$0xff]  ;;  %v20_v5 = vld [vmem:[%s3336_s0 + $0x18] sm:$0xff]  ;;  %v143_v8 = vlaneseq  ;;  %v1996_v9 = vmov 1966171168  }
   0x5   :  { %1681 = vmatpush3.msra.mxu0 %v23_v1  ;;  %v21_v6 = vld [vmem:[%s3336_s0 + $0x20] sm:$0xff]  ;;  %v22_v7 = vld [vmem:[%s3336_s0 + $0x28] sm:$0xff]  ;;  %v413_v10 = vunpack.c.l.s4 %v1996_v9  ;;  %v3340_v40 = vmov 0   ;;  %v27_v44 = vld [vmem:[%s3338_s2 + $0x10] sm:$0xff] }
   0x6   :  { %1683 = vmatmul.mubr.msk.f32.vlgmr.msra.gmra.mxu0 %vm29_vm0, %v18_v3  ;;  %v144_v12 = vshrl.u32 %v143_v8, 7  ;;  %v25_v38 = vld [vmem:[%s3338_s2] sm:$0xff]  ;;  %v26_v39 = vld [vmem:[%s3338_s2 + $0x8] sm:$0xff]  ;;  %vm650_vm3 = vnez %v27_v44  ;;  %v28_v61 = vld [vmem:[%s3338_s2 + $0x18] sm:$0xff]  ;;  %s2000_s2 = smov [#allocation2]  }
   0x7   :  { %1685 = vmatprep.mubr.msk.f32.mxu0 %vm29_vm0, %v19_v4  ;;  %v414_v13 = vunpack.c.0.s8 %v413_v10  ;;  %vm648_vm1 = vnez %v25_v38  ;;  %vm649_vm2 = vnez %v26_v39  ;;  %v654_v56 = vsel %vm650_vm3, 16843009, %v3340_v40  ;;  %s1585_s7 = sshll.u32 %s2000_s2, 4  ;;  %s1586_s7 = int_to_ptr.vmem [resolvable:$true] %s1585_s7 }
   0x8   :  { %v145_v18 = vsub.s32 0, %v144_v12  ;;  %v212_v19 = vsub.s32 1, %v144_v12  ;;  %v279_v34 = vsub.s32 2, %v144_v12  ;;  %v346_v36 = vsub.s32 3, %v144_v12  ;;  %s1974_s8 = scalar_lea.vmem %s1586_s7, 512  ;;  %p1979_p1 = scmp.lt.s32.totalorder %s1586_s7, %s1586_s7 }
   0x9   :  { %v417_v16 = vsub.s32 %v414_v13, %v144_v12  ;;  %v652_v41 = vsel %vm648_vm1, 16843009, %v3340_v40  ;;  %v653_v43 = vsel %vm649_vm2, 16843009, %v3340_v40  ;;  %v664_v62 = vunpack.c.0.s8 %v654_v56  ;;  %p1975_p0 = scmp.ne.s32.totalorder %s1586_s7, %s1974_s8  ;;  %p1980_p2 = scmp.lt.s32.totalorder %s1974_s8, %s1974_s8 }
   0xa   :  { %1686 = vmatmul.mubr.msk.f32.gmra.mxu0 %vm29_vm0, %v20_v5  ;;  %v657_v42 = vunpack.c.1.s8 %v652_v41  ;;  %v656_v45 = vunpack.c.0.s8 %v652_v41  ;;  %v658_v47 = vunpack.c.2.s8 %v652_v41  ;;  %v659_v48 = vunpack.c.3.s8 %v652_v41 }
   0xb   :  { %1688 = vmatprep.mubr.msk.f32.mxu0 %vm29_vm0, %v21_v6  ;;  %v660_v49 = vunpack.c.0.s8 %v653_v43  ;;  %v661_v58 = vunpack.c.1.s8 %v653_v43  ;;  %v662_v59 = vunpack.c.2.s8 %v653_v43  ;;  %v663_v60 = vunpack.c.3.s8 %v653_v43  ;;  %p1981_p3 = por %p1980_p2, %p1979_p1 }
   0xc   :  { %v674_v46 = vpack.c.b16 %v657_v42, %v657_v42  ;;  %v672_v50 = vpack.c.b16 %v656_v45, %v656_v45  ;;  %v676_v54 = vpack.c.b16 %v658_v47, %v658_v47  ;;  %v678_v55 = vpack.c.b16 %v659_v48, %v659_v48 }
   0xd   :  { %v680_v57 = vpack.c.b16 %v660_v49, %v660_v49  ;;  %v682_v6 = vpack.c.b16 %v661_v58, %v661_v58  ;;  %vm651_vm5 = vnez %v28_v61  ;;  %v686_v8 = vpack.c.b16 %v663_v60, %v663_v60  ;;  %p1982_p4 = pnand %p1981_p3, %p1975_p0 }
   0xe   :  { %1689 = vmatmul.mubr.msk.f32.gmra.mxu0 %vm29_vm0, %v22_v7  ;;  %v675_v53 = vpack.c.b8 %v674_v46, %v674_v46  ;;  %v673_v63 = vpack.c.b8 %v672_v50, %v672_v50  ;;  %v677_v3 = vpack.c.b8 %v676_v54, %v676_v54  ;;  %v679_v4 = vpack.c.b8 %v678_v55, %v678_v55 }
   0xf   :  { %v681_v5 = vpack.c.b8 %v680_v57, %v680_v57  ;;  %v684_v7 = vpack.c.b16 %v662_v59, %v662_v59  ;;  %v665_v9 = vunpack.c.1.s8 %v654_v56  ;;  %v666_v10 = vunpack.c.2.s8 %v654_v56 }
  0x10   :  { %vm2120_vm4 = vnez %v675_v53  ;;  %v688_v12 = vpack.c.b16 %v664_v62, %v664_v62  ;;  %vm2128_vm6 = vnez %v673_v63  ;;  %vm2135_vm7 = vnez %v677_v3 }
  0x11   :  { %vm2142_vm8 = vnez %v679_v4  ;;  %vm2146_vm9 = vnez %v681_v5  ;;  %v720_v38 = vsel %vm2128_vm6, 16843009, %v3340_v40  ;;  %v722_v41 = vsel %vm2135_vm7, 16843009, %v3340_v40 }
  0x12   :  { %v723_v43 = vsel %vm2142_vm8, 16843009, %v3340_v40  ;;  %v724_v44 = vsel %vm2146_vm9, 16843009, %v3340_v40  ;;  %v736_v50 = vunpack.c.0.s8 %v720_v38  ;;  %v738_v54 = vunpack.c.0.s8 %v722_v41 }
  0x13   :  { %v739_v55 = vunpack.c.0.s8 %v723_v43  ;;  %v740_v61 = vunpack.c.0.s8 %v724_v44 }
  0x14   :  { %vm2211_vm1 = vcmp.ne.s32.totalorder %v736_v50, 0  ;;  %vm2218_vm2 = vcmp.ne.s32.totalorder %v738_v54, 0 }
  0x15   :  { %vm2241_vm6 = vcmp.ne.s32.totalorder %v739_v55, 0  ;;  %vm2252_vm7 = vcmp.ne.s32.totalorder %v740_v61, 0 }
  0xc6   :  { %v2053_v11 = vpop.f32.mrf.mxu0 }
  0xc7   :  { %3386 = vst [vmem:[#allocation5_spill] sm:$0xff] %v2053_v11 }
  0xc8   :  { %v2055_v14 = vpop.f32.mrf.mxu0 }
  0xc9   :  { %3387 = vst [vmem:[#allocation6_spill] sm:$0xff] %v2055_v14 }
  0xca   :  { %v2057_v15 = vpop.f32.mrf.mxu0 }
  0xcb   :  { %3388 = vst [vmem:[#allocation7_spill] sm:$0xff] %v2057_v15 }
  0xcc   :  { %v2059_v17 = vpop.f32.mrf.mxu0 }
  0xcd   :  { %3389 = vst [vmem:[#allocation8_spill] sm:$0xff] %v2059_v17 }
  0xce   :  { %v1690_v20 = vpop.f32.mrf.mxu0 }
  0xcf   :  { %v418_v21 = vrot.slane %v1690_v20, %v417_v16 }
  0xd0   :  { %v134_v22 = vpop.f32.mrf.mxu0 }
  0xd1   :  { %v419_v23 = vcombine.high %v418_v21, %v418_v21  ;;  %v426_v24 = vrot.slane %v418_v21, %v417_v16  ;;  %v146_v25 = vrot.slane %v134_v22, %v145_v18  ;;  %v213_v26 = vrot.slane %v134_v22, %v212_v19 }
  0xd2   :  { %v2069_v35 = vrot.slane %v134_v22, %v279_v34  ;;  %v2073_v37 = vrot.slane %v134_v22, %v346_v36  ;;  %v2140_v21 = vsel %vm651_vm5, 16843009, %v3340_v40  ;;  %v689_v34 = vpack.c.b8 %v688_v12, %v688_v12 }
  0xd3   :  { %v433_v27 = vrot.slane %v419_v23, %v417_v16  ;;  %v434_v28 = vcombine.high %v426_v24, %v426_v24  ;;  %v2061_v29 = vrot.slane %v426_v24, %v145_v18  ;;  %215 = vbcast.lane.b32.xlu1 %v213_v26, 256  ;;  %148 = vbcast.lane.b32.xlu0 %v146_v25, 256  ;;  %v721_v16 = vsel %vm2120_vm4, 16843009, %v3340_v40 }
  0xd4   :  { %v683_v24 = vpack.c.b8 %v682_v6, %v682_v6  ;;  %v668_v36 = vunpack.c.0.s8 %v2140_v21  ;;  %v737_v39 = vunpack.c.0.s8 %v721_v16  ;;  %vm712_vm13 = vnez %v689_v34 }
  0xd5   :  { %v435_v30 = vcombine.high %v433_v27, %v433_v27  ;;  %v2063_v31 = vrot.slane %v433_v27, %v145_v18  ;;  %v2065_v32 = vrot.slane %v434_v28, %v145_v18  ;;  %v690_v27 = vpack.c.b16 %v665_v9, %v665_v9 }
  0xd6   :  { %v692_v28 = vpack.c.b16 %v666_v10, %v666_v10  ;;  %vm709_vm10 = vnez %v683_v24  ;;  %v696_v53 = vpack.c.b16 %v668_v36, %v668_v36  ;;  %vm2190_vm14 = vcmp.ne.s32.totalorder %v737_v39, 0 }
  0xd7   :  { %v2067_v33 = vrot.slane %v435_v30, %v145_v18  ;;  %219 = vbcast.lane.b32.xlu1 %v213_v26, 264  ;;  %152 = vbcast.lane.b32.xlu0 %v146_v25, 264  ;;  %v667_v30 = vunpack.c.3.s8 %v654_v56  ;;  %v691_v47 = vpack.c.b8 %v690_v27, %v690_v27  ;;  %v2177_v58 = vsel %vm709_vm10, 16843009, %v3340_v40 }
  0xd8   :  { %v693_v48 = vpack.c.b8 %v692_v28, %v692_v28  ;;  %v2195_v3 = vsel %vm712_vm13, 16843009, %v3340_v40  ;;  %v697_v9 = vpack.c.b8 %v696_v53, %v696_v53  ;;  %v741_v16 = vunpack.c.0.s8 %v2177_v58 }
  0xd9   :  { %v694_v49 = vpack.c.b16 %v667_v30, %v667_v30  ;;  %vm2197_vm15 = vnez %v691_v47  ;;  %v670_v27 = vunpack.c.2.s8 %v2140_v21 }
  0xda   :  { %vm2201_vm0 = vnez %v693_v48  ;;  %vm716_vm4 = vnez %v697_v9  ;;  %vm2287_vm8 = vcmp.ne.s32.totalorder %v741_v16, 0 }
  0xdb   :  { %223 = vbcast.lane.b32.xlu1 %v213_v26, 272  ;;  %156 = vbcast.lane.b32.xlu0 %v146_v25, 272  ;;  %v695_v5 = vpack.c.b8 %v694_v49, %v694_v49  ;;  %v2259_v50 = vsel %vm716_vm4, 16843009, %v3340_v40  ;;  %v700_v53 = vpack.c.b16 %v670_v27, %v670_v27 }
  0xdd   :  { %vm2235_vm3 = vnez %v695_v5 }
  0xde   :  { %v2250_v47 = vsel %vm2235_vm3, 16843009, %v3340_v40 }
  0xdf   :  { %227 = vbcast.lane.b32.xlu1 %v213_v26, 280  ;;  %160 = vbcast.lane.b32.xlu0 %v146_v25, 280 }
  0xe3   :  { %231 = vbcast.lane.b32.xlu1 %v213_v26, 288  ;;  %164 = vbcast.lane.b32.xlu0 %v146_v25, 288 }
  0xe7   :  { %235 = vbcast.lane.b32.xlu1 %v213_v26, 296  ;;  %168 = vbcast.lane.b32.xlu0 %v146_v25, 296 }
  0xeb   :  { %239 = vbcast.lane.b32.xlu1 %v213_v26, 304  ;;  %172 = vbcast.lane.b32.xlu0 %v146_v25, 304 }
  0xef   :  { %243 = vbcast.lane.b32.xlu1 %v213_v26, 312  ;;  %176 = vbcast.lane.b32.xlu0 %v146_v25, 312 }
  0xf3   :  { %247 = vbcast.lane.b32.xlu1 %v213_v26, 320  ;;  %180 = vbcast.lane.b32.xlu0 %v146_v25, 320 }
  0xf7   :  { %251 = vbcast.lane.b32.xlu1 %v213_v26, 328  ;;  %184 = vbcast.lane.b32.xlu0 %v146_v25, 328 }
  0xfb   :  { %255 = vbcast.lane.b32.xlu1 %v213_v26, 336  ;;  %188 = vbcast.lane.b32.xlu0 %v146_v25, 336 }
  0xff   :  { %259 = vbcast.lane.b32.xlu1 %v213_v26, 344  ;;  %192 = vbcast.lane.b32.xlu0 %v146_v25, 344 }
 0x103   :  { %263 = vbcast.lane.b32.xlu1 %v213_v26, 352  ;;  %196 = vbcast.lane.b32.xlu0 %v146_v25, 352 }
 0x107   :  { %267 = vbcast.lane.b32.xlu1 %v213_v26, 360  ;;  %200 = vbcast.lane.b32.xlu0 %v146_v25, 360 }
 0x10b   :  { %271 = vbcast.lane.b32.xlu1 %v213_v26, 368  ;;  %204 = vbcast.lane.b32.xlu0 %v146_v25, 368 }
 0x10f   :  { %275 = vbcast.lane.b32.xlu1 %v213_v26, 376  ;;  %208 = vbcast.lane.b32.xlu0 %v146_v25, 376  ;;  %v685_v25 = vpack.c.b8 %v684_v7, %v684_v7  ;;  %v687_v26 = vpack.c.b8 %v686_v8, %v686_v8 }
 0x111   :  { %vm2166_vm11 = vnez %v685_v25  ;;  %vm2170_vm12 = vnez %v687_v26  ;;  %v744_v25 = vunpack.c.0.s8 %v2195_v3  ;;  %v3432_v3 = vmov 0 }
 0x112   :  { %v2183_v62 = vsel %vm2166_vm11, 16843009, %v3340_v40  ;;  %v2188_v63 = vsel %vm2170_vm12, 16843009, %v3340_v40 }
 0x113   :  { %286 = vbcast.lane.b32.xlu1 %v2069_v35, 264  ;;  %282 = vbcast.lane.b32.xlu0 %v2069_v35, 256  ;;  %v743_v24 = vunpack.c.0.s8 %v2188_v63  ;;  %vm2339_vm12 = vcmp.ne.s32.totalorder %v744_v25, 0 }
 0x115   :  { %vm2323_vm11 = vcmp.ne.s32.totalorder %v743_v24, 0  ;;  %v3429_v24 = vmov 0 }
 0x116   :  { %v3430_v24 = vsel %vm2339_vm12, 4294967295, %v3429_v24 }
 0x117   :  { %353 = vbcast.lane.b32.xlu1 %v2073_v37, 264  ;;  %349 = vbcast.lane.b32.xlu0 %v2073_v37, 256  ;;  %3431 = vst [vmem:[#allocation10_spill] sm:$0xff] %v3430_v24 }
 0x11b   :  { %357 = vbcast.lane.b32.xlu1 %v2073_v37, 272  ;;  %290 = vbcast.lane.b32.xlu0 %v2069_v35, 272 }
 0x11f   :  { %361 = vbcast.lane.b32.xlu1 %v2073_v37, 280  ;;  %294 = vbcast.lane.b32.xlu0 %v2069_v35, 280 }
 0x123   :  { %365 = vbcast.lane.b32.xlu1 %v2073_v37, 288  ;;  %298 = vbcast.lane.b32.xlu0 %v2069_v35, 288 }
 0x127   :  { %369 = vbcast.lane.b32.xlu1 %v2073_v37, 296  ;;  %302 = vbcast.lane.b32.xlu0 %v2069_v35, 296 }
 0x12b   :  { %373 = vbcast.lane.b32.xlu1 %v2073_v37, 304  ;;  %306 = vbcast.lane.b32.xlu0 %v2069_v35, 304 }
 0x12f   :  { %377 = vbcast.lane.b32.xlu1 %v2073_v37, 312  ;;  %310 = vbcast.lane.b32.xlu0 %v2069_v35, 312 }
 0x133   :  { %381 = vbcast.lane.b32.xlu1 %v2073_v37, 320  ;;  %314 = vbcast.lane.b32.xlu0 %v2069_v35, 320 }
 0x137   :  { %385 = vbcast.lane.b32.xlu1 %v2073_v37, 328  ;;  %318 = vbcast.lane.b32.xlu0 %v2069_v35, 328 }
 0x13b   :  { %389 = vbcast.lane.b32.xlu1 %v2073_v37, 336  ;;  %322 = vbcast.lane.b32.xlu0 %v2069_v35, 336 }
 0x13f   :  { %393 = vbcast.lane.b32.xlu1 %v2073_v37, 344  ;;  %326 = vbcast.lane.b32.xlu0 %v2069_v35, 344 }
 0x143   :  { %397 = vbcast.lane.b32.xlu1 %v2073_v37, 352  ;;  %330 = vbcast.lane.b32.xlu0 %v2069_v35, 352 }
 0x145   :  { %v2110_v51 = vpop.permute.xlu1 %215  ;;  %v2112_v52 = vpop.permute.xlu0 %148 }
 0x146   :  { %v472_v6 = vadd.f32 %v2063_v31, %v2110_v51  ;;  %v456_v7 = vadd.f32 %v2061_v29, %v2112_v52 }
 0x147   :  { %401 = vbcast.lane.b32.xlu1 %v2073_v37, 360  ;;  %334 = vbcast.lane.b32.xlu0 %v2069_v35, 360 }
 0x148   :  { %v536_v28 = vmul.f32 0.2, %v472_v6  ;;  %v520_v30 = vmul.f32 0.2, %v456_v7 }
 0x149   :  { %v220_v1 = vpop.permute.xlu1 %219  ;;  %v2124_v2 = vpop.permute.xlu0 %152 }
 0x14a   :  { %v473_v60 = vadd.f32 %v2063_v31, %v220_v1  ;;  %v457_v8 = vadd.f32 %v2061_v29, %v2124_v2  ;;  %v742_v2 = vunpack.c.0.s8 %v2183_v62  ;;  %v584_v54 = vmax.f32 %v456_v7, %v520_v30 }
 0x14b   :  { %405 = vbcast.lane.b32.xlu1 %v2073_v37, 368  ;;  %338 = vbcast.lane.b32.xlu0 %v2069_v35, 368 }
 0x14c   :  { %v537_v23 = vmul.f32 0.2, %v473_v60  ;;  %v521_v34 = vmul.f32 0.2, %v457_v8  ;;  %vm2304_vm9 = vcmp.ne.s32.totalorder %v742_v2, 0 }
 0x14d   :  { %v224_v19 = vpop.permute.xlu1 %223  ;;  %v157_v20 = vpop.permute.xlu0 %156 }
 0x14e   :  { %v474_v12 = vadd.f32 %v2063_v31, %v224_v19  ;;  %v458_v13 = vadd.f32 %v2061_v29, %v157_v20  ;;  %v2228_v19 = vsel %vm2197_vm15, 16843009, %v3340_v40  ;;  %v2233_v20 = vsel %vm2201_vm0, 16843009, %v3340_v40 }
 0x14f   :  { %409 = vbcast.lane.b32.xlu1 %v2073_v37, 376  ;;  %342 = vbcast.lane.b32.xlu0 %v2069_v35, 376  ;;  %v669_v35 = vunpack.c.1.s8 %v2140_v21  ;;  %v601_v43 = vmax.f32 %v473_v60, %v537_v23  ;;  %v585_v55 = vmax.f32 %v457_v8, %v521_v34  ;;  %v2281_v23 = vsel %vm2211_vm1, %v584_v54, -1e+30 }
 0x150   :  { %v538_v36 = vmul.f32 0.2, %v474_v12  ;;  %v522_v38 = vmul.f32 0.2, %v458_v13 }
 0x151   :  { %v228_v42 = vpop.permute.xlu1 %227  ;;  %v161_v37 = vpop.permute.xlu0 %160  ;;  %v698_v59 = vpack.c.b16 %v669_v35, %v669_v35  ;;  %v2267_v4 = vsel %vm2190_vm14, %v601_v43, -1e+30  ;;  %v2285_v26 = vsel %vm2190_vm14, %v585_v55, -1e+30 }
 0x152   :  { %v475_v39 = vadd.f32 %v2063_v31, %v228_v42  ;;  %v459_v45 = vadd.f32 %v2061_v29, %v161_v37  ;;  %v745_v42 = vunpack.c.0.s8 %v2228_v19  ;;  %v600_v37 = vmax.f32 %v472_v6, %v536_v28 }
 0x153   :  { %v699_v51 = vpack.c.b8 %v698_v59, %v698_v59  ;;  %v602_v58 = vmax.f32 %v474_v12, %v538_v36  ;;  %v586_v59 = vmax.f32 %v458_v13, %v522_v38 }
 0x154   :  { %v539_v60 = vmul.f32 0.2, %v475_v39  ;;  %v523_v5 = vmul.f32 0.2, %v459_v45  ;;  %vm2349_vm13 = vcmp.ne.s32.totalorder %v745_v42, 0 }
 0x155   :  { %v232_v56 = vpop.permute.xlu1 %231  ;;  %v2174_v57 = vpop.permute.xlu0 %164  ;;  %vm717_vm5 = vnez %v699_v51  ;;  %v2277_v51 = vsel %vm2211_vm1, %v600_v37, -1e+30  ;;  %v2295_v27 = vsel %vm2218_vm2, %v602_v58, -1e+30  ;;  %v2299_v28 = vsel %vm2218_vm2, %v586_v59, -1e+30 }
 0x156   :  { %v476_v46 = vadd.f32 %v2063_v31, %v232_v56  ;;  %v2262_v56 = vsel %vm717_vm5, 16843009, %v3340_v40  ;;  %v460_v6 = vadd.f32 %v2061_v29, %v2174_v57  ;;  %v603_v30 = vmax.f32 %v475_v39, %v539_v60 }
 0x157   :  { %v587_v38 = vmax.f32 %v459_v45, %v523_v5  ;;  %v3433_v3 = vsel %vm2349_vm13, 4294967295, %v3432_v3 }
 0x158   :  { %v540_v9 = vmul.f32 0.2, %v476_v46  ;;  %v524_v43 = vmul.f32 0.2, %v460_v6  ;;  %v2319_v2 = vsel %vm2241_vm6, %v603_v30, -1e+30 }
 0x159   :  { %v236_v18 = vpop.permute.xlu1 %235  ;;  %v169_v22 = vpop.permute.xlu0 %168  ;;  %3434 = vst [vmem:[#allocation11_spill] sm:$0xff] %v3433_v3 }
 0x15a   :  { %v477_v7 = vadd.f32 %v2063_v31, %v236_v18  ;;  %v461_v8 = vadd.f32 %v2061_v29, %v169_v22  ;;  %v701_v18 = vpack.c.b8 %v700_v53, %v700_v53  ;;  %v885_v22 = vmax.f32 %v2277_v51, %v2267_v4 }
 0x15b   :  { %v604_v16 = vmax.f32 %v476_v46, %v540_v9  ;;  %v864_v53 = vmax.f32 %v2281_v23, %v2285_v26  ;;  %v588_v30 = vmax.f32 %v460_v6, %v524_v43 }
 0x15c   :  { %v541_v54 = vmul.f32 0.2, %v477_v7  ;;  %v525_v55 = vmul.f32 0.2, %v461_v8  ;;  %v886_v39 = vmax.f32 %v885_v22, %v2295_v27  ;;  %vm2311_vm10 = vnez %v701_v18 }
 0x15d   :  { %v240_v41 = vpop.permute.xlu1 %239  ;;  %v173_v35 = vpop.permute.xlu0 %172  ;;  %v865_v46 = vmax.f32 %v864_v53, %v2299_v28  ;;  %v2335_v22 = vsel %vm2252_vm7, %v604_v16, -1e+30 }
 0x15e   :  { %v478_v37 = vadd.f32 %v2063_v31, %v240_v41  ;;  %v462_v59 = vadd.f32 %v2061_v29, %v173_v35  ;;  %v671_v41 = vunpack.c.3.s8 %v2140_v21  ;;  %v3426_v35 = vmov 0 }
 0x15f   :  { %v3427_v35 = vsel %vm2323_vm11, 4294967295, %v3426_v35  ;;  %v2331_v21 = vsel %vm2241_vm6, %v587_v38, -1e+30  ;;  %v887_v38 = vmax.f32 %v886_v39, %v2319_v2 }
 0x160   :  { %3428 = vst [vmem:[#allocation9_spill] sm:$0xff] %v3427_v35  ;;  %v542_v63 = vmul.f32 0.2, %v478_v37  ;;  %v526_v53 = vmul.f32 0.2, %v462_v59  ;;  %v702_v16 = vpack.c.b16 %v671_v41, %v671_v41  ;;  %v866_v6 = vmax.f32 %v865_v46, %v2331_v21 }
 0x161   :  { %v244_v61 = vpop.permute.xlu1 %243  ;;  %v177_v62 = vpop.permute.xlu0 %176 }
 0x162   :  { %v479_v60 = vadd.f32 %v2063_v31, %v244_v61  ;;  %v463_v61 = vadd.f32 %v2061_v29, %v177_v62  ;;  %v605_v62 = vmax.f32 %v477_v7, %v541_v54  ;;  %v2361_v54 = vsel %vm2252_vm7, %v588_v30, -1e+30 }
 0x163   :  { %v590_v45 = vmax.f32 %v462_v59, %v526_v53  ;;  %v703_v59 = vpack.c.b8 %v702_v16, %v702_v16 }
 0x164   :  { %v543_v12 = vmul.f32 0.2, %v479_v60  ;;  %v527_v43 = vmul.f32 0.2, %v463_v61  ;;  %v2366_v42 = vsel %vm2287_vm8, %v605_v62, -1e+30 }
 0x165   :  { %v248_v34 = vpop.permute.xlu1 %247  ;;  %v181_v36 = vpop.permute.xlu0 %180  ;;  %v3436_v62 = vmov 0  ;;  %vm2432_vm5 = vnez %v703_v59 }
 0x166   :  { %v480_v5 = vadd.f32 %v2063_v31, %v248_v34  ;;  %v589_v34 = vmax.f32 %v461_v8, %v525_v55  ;;  %v464_v13 = vadd.f32 %v2061_v29, %v181_v36  ;;  %v2356_v8 = vsel %vm2311_vm10, 16843009, %v3340_v40 }
 0x167   :  { %v888_v36 = vmax.f32 %v887_v38, %v2335_v22  ;;  %v606_v55 = vmax.f32 %v478_v37, %v542_v63  ;;  %v607_v46 = vmax.f32 %v479_v60, %v543_v12  ;;  %v867_v37 = vmax.f32 %v866_v6, %v2361_v54 }
 0x168   :  { %v544_v49 = vmul.f32 0.2, %v480_v5  ;;  %v2370_v39 = vsel %vm2287_vm8, %v589_v34, -1e+30  ;;  %v528_v41 = vmul.f32 0.2, %v464_v13  ;;  %v591_v63 = vmax.f32 %v463_v61, %v527_v43 }
 0x169   :  { %v252_v9 = vpop.permute.xlu1 %251  ;;  %v185_v18 = vpop.permute.xlu0 %184  ;;  %v3435_v40 = vunpack.c.0.s8 %v2233_v20  ;;  %v889_v12 = vmax.f32 %v888_v36, %v2366_v42  ;;  %v2384_v60 = vsel %vm2304_vm9, %v606_v55, -1e+30  ;;  %v3439_v6 = vunpack.c.0.s8 %v2250_v47 }
 0x16a   :  { %v481_v1 = vadd.f32 %v2063_v31, %v252_v9  ;;  %v465_v19 = vadd.f32 %v2061_v29, %v185_v18  ;;  %v608_v18 = vmax.f32 %v480_v5, %v544_v49  ;;  %v3440_v49 = vmov 0 }
 0x16b   :  { %vm2377_vm15 = vcmp.ne.s32.totalorder %v3435_v40, 0  ;;  %vm2388_vm0 = vcmp.ne.s32.totalorder %v3439_v6, 0  ;;  %v868_v20 = vmax.f32 %v867_v37, %v2370_v39  ;;  %v2396_v61 = vsel %vm2304_vm9, %v590_v45, -1e+30 }
 0x16c   :  { %v545_v9 = vmul.f32 0.2, %v481_v1  ;;  %v3437_v62 = vsel %vm2377_vm15, 4294967295, %v3436_v62  ;;  %v529_v53 = vmul.f32 0.2, %v465_v19  ;;  %v3441_v49 = vsel %vm2388_vm0, 4294967295, %v3440_v49 }
 0x16d   :  { %v256_v25 = vpop.permute.xlu1 %255  ;;  %v189_v7 = vpop.permute.xlu0 %188  ;;  %3438 = vst [vmem:[#allocation12_spill] sm:$0xff] %v3437_v62  ;;  %3442 = vst [vmem:[#allocation13_spill] sm:$0xff] %v3441_v49  ;;  %v592_v5 = vmax.f32 %v464_v13, %v528_v41  ;;  %v2401_v43 = vsel %vm2323_vm11, %v607_v46, -1e+30  ;;  %v890_v36 = vmax.f32 %v889_v12, %v2384_v60  ;;  %v2406_v55 = vsel %vm2323_vm11, %v591_v63, -1e+30 }
 0x16e   :  { %v482_v38 = vadd.f32 %v2063_v31, %v256_v25  ;;  %v466_v30 = vadd.f32 %v2061_v29, %v189_v7  ;;  %v609_v47 = vmax.f32 %v481_v1, %v545_v9  ;;  %v2410_v45 = vsel %vm2339_vm12, %v608_v18, -1e+30 }
 0x16f   :  { %v3444_v41 = vmov 0  ;;  %v593_v9 = vmax.f32 %v465_v19, %v529_v53  ;;  %v869_v12 = vmax.f32 %v868_v20, %v2396_v61  ;;  %v891_v18 = vmax.f32 %v890_v36, %v2401_v43 }
 0x170   :  { %v546_v25 = vmul.f32 0.2, %v482_v38  ;;  %v530_v7 = vmul.f32 0.2, %v466_v30  ;;  %v2424_v6 = vsel %vm2339_vm12, %v592_v5, -1e+30 }
 0x171   :  { %v260_v34 = vpop.permute.xlu1 %259  ;;  %v193_v17 = vpop.permute.xlu0 %192  ;;  %v2438_v53 = vsel %vm2349_vm13, %v609_v47, -1e+30  ;;  %v870_v5 = vmax.f32 %v869_v12, %v2406_v55  ;;  %v2444_v59 = vsel %vm2349_vm13, %v593_v9, -1e+30  ;;  %v750_v47 = vunpack.c.0.s8 %v2356_v8 }
 0x172   :  { %v483_v40 = vadd.f32 %v2063_v31, %v260_v34  ;;  %v467_v16 = vadd.f32 %v2061_v29, %v193_v17  ;;  %v3443_v17 = vunpack.c.0.s8 %v2259_v50  ;;  %v3447_v50 = vunpack.c.0.s8 %v2262_v56 }
 0x173   :  { %v610_v20 = vmax.f32 %v482_v38, %v546_v25  ;;  %v594_v36 = vmax.f32 %v466_v30, %v530_v7  ;;  %v871_v38 = vmax.f32 %v870_v5, %v2424_v6  ;;  %v3453_v7 = vmov 0  }
 0x174   :  { %v547_v13 = vmul.f32 0.2, %v483_v40  ;;  %vm2414_vm3 = vcmp.ne.s32.totalorder %v3443_v17, 0  ;;  %v531_v37 = vmul.f32 0.2, %v467_v16  ;;  %vm2428_vm4 = vcmp.ne.s32.totalorder %v3447_v50, 0 }
 0x175   :  { %v3445_v41 = vsel %vm2414_vm3, 4294967295, %v3444_v41  ;;  %v264_v1 = vpop.permute.xlu1 %263  ;;  %v197_v46 = vpop.permute.xlu0 %196  ;;  %v3448_v17 = vmov 0  ;;  %v872_v9 = vmax.f32 %v871_v38, %v2444_v59  ;;  %vm2475_vm10 = vcmp.ne.s32.totalorder %v750_v47, 0 }
 0x176   :  { %3446 = vst [vmem:[#allocation14_spill] sm:$0xff] %v3445_v41  ;;  %v484_v34 = vadd.f32 %v2063_v31, %v264_v1  ;;  %v468_v63 = vadd.f32 %v2061_v29, %v197_v46  ;;  %v3449_v17 = vsel %vm2428_vm4, 4294967295, %v3448_v17  ;;  %v892_v46 = vmax.f32 %v891_v18, %v2410_v45 }
 0x177   :  { %3450 = vst [vmem:[#allocation15_spill] sm:$0xff] %v3449_v17  ;;  %v611_v56 = vmax.f32 %v483_v40, %v547_v13  ;;  %v595_v14 = vmax.f32 %v467_v16, %v531_v37  ;;  %v735_v40 = vsel %vm2432_vm5, 16843009, %v3453_v7  ;;  %v2456_v13 = vsel %vm2377_vm15, %v610_v20, -1e+30 }
 0x178   :  { %v548_v1 = vmul.f32 0.2, %v484_v34  ;;  %v532_v50 = vmul.f32 0.2, %v468_v63  ;;  %v893_v30 = vmax.f32 %v892_v46, %v2438_v53  ;;  %v2460_v16 = vsel %vm2377_vm15, %v594_v36, -1e+30 }
 0x179   :  { %v268_v15 = vpop.permute.xlu1 %267  ;;  %v201_v11 = vpop.permute.xlu0 %200  ;;  %v2465_v37 = vsel %vm2388_vm0, %v611_v56, -1e+30  ;;  %v2469_v20 = vsel %vm2388_vm0, %v595_v14, -1e+30  ;;  %v873_v46 = vmax.f32 %v872_v9, %v2460_v16  ;;  %v3454_v56 = vmov 0 }
 0x17a   :  { %v485_v24 = vadd.f32 %v2063_v31, %v268_v15  ;;  %v469_v25 = vadd.f32 %v2061_v29, %v201_v11  ;;  %v612_v15 = vmax.f32 %v484_v34, %v548_v1  ;;  %v596_v11 = vmax.f32 %v468_v63, %v532_v50 }
 0x17b   :  { %v894_v1 = vmax.f32 %v893_v30, %v2456_v13  ;;  %v3455_v56 = vsel %vm2475_vm10, 4294967295, %v3454_v56  ;;  %v874_v7 = vmax.f32 %v873_v46, %v2469_v20 }
 0x17c   :  { %v549_v8 = vmul.f32 0.2, %v485_v24  ;;  %v533_v12 = vmul.f32 0.2, %v469_v25  ;;  %3456 = vst [vmem:[#allocation16_spill] sm:$0xff] %v3455_v56 }
 0x17d   :  { %v272_v18 = vpop.permute.xlu1 %271  ;;  %v205_v19 = vpop.permute.xlu0 %204  ;;  %v2481_v63 = vsel %vm2414_vm3, %v612_v15, -1e+30  ;;  %v2487_v30 = vsel %vm2414_vm3, %v596_v11, -1e+30 }
 0x17e   :  { %v613_v5 = vmax.f32 %v485_v24, %v549_v8  ;;  %v486_v36 = vadd.f32 %v2063_v31, %v272_v18  ;;  %v470_v34 = vadd.f32 %v2061_v29, %v205_v19  ;;  %v597_v38 = vmax.f32 %v469_v25, %v533_v12 }
 0x17f   :  { %v895_v24 = vmax.f32 %v894_v1, %v2465_v37  ;;  %v751_v8 = vunpack.c.0.s8 %v735_v40  ;;  %v875_v40 = vmax.f32 %v874_v7, %v2487_v30 }
 0x180   :  { %v550_v14 = vmul.f32 0.2, %v486_v36  ;;  %v534_v50 = vmul.f32 0.2, %v470_v34  ;;  %v2491_v9 = vsel %vm2428_vm4, %v613_v5, -1e+30 }
 0x181   :  { %v276_v25 = vpop.permute.xlu1 %275  ;;  %v209_v47 = vpop.permute.xlu0 %208  ;;  %v896_v19 = vmax.f32 %v895_v24, %v2481_v63  ;;  %v2497_v1 = vsel %vm2428_vm4, %v597_v38, -1e+30  ;;  %vm2510_vm5 = vcmp.ne.s32.totalorder %v751_v8, 0 }
 0x182   :  { %v614_v12 = vmax.f32 %v486_v36, %v550_v14  ;;  %v598_v15 = vmax.f32 %v470_v34, %v534_v50  ;;  %v487_v18 = vadd.f32 %v2063_v31, %v276_v25  ;;  %v471_v11 = vadd.f32 %v2061_v29, %v209_v47 }
 0x183   :  { %v897_v36 = vmax.f32 %v896_v19, %v2491_v9  ;;  %v3457_v34 = vmov 0  ;;  %v876_v50 = vmax.f32 %v875_v40, %v2497_v1 }
 0x184   :  { %v2503_v46 = vsel %vm2475_vm10, %v614_v12, -1e+30  ;;  %v551_v5 = vmul.f32 0.2, %v487_v18  ;;  %v2508_v31 = vsel %vm2475_vm10, %v598_v15, -1e+30 }
 0x185   :  { %v3458_v34 = vsel %vm2510_vm5, 4294967295, %v3457_v34  ;;  %v535_v38 = vmul.f32 0.2, %v471_v11  ;;  %v287_v14 = vpop.permute.xlu1 %286  ;;  %v283_v29 = vpop.permute.xlu0 %282  ;;  %v898_v47 = vmax.f32 %v897_v36, %v2503_v46  ;;  %v877_v15 = vmax.f32 %v876_v50, %v2508_v31 }
 0x186   :  { %3459 = vst [vmem:[#allocation17_spill] sm:$0xff] %v3458_v34  ;;  %v615_v24 = vmax.f32 %v487_v18, %v551_v5  ;;  %v489_v7 = vadd.f32 %v2065_v32, %v287_v14  ;;  %v488_v25 = vadd.f32 %v2065_v32, %v283_v29 }
 0x187   :  { %v599_v12 = vmax.f32 %v471_v11, %v535_v38 }
 0x188   :  { %v2521_v8 = vsel %vm2510_vm5, %v615_v24, -1e+30  ;;  %v553_v19 = vmul.f32 0.2, %v489_v7  ;;  %v552_v56 = vmul.f32 0.2, %v488_v25 }
 0x189   :  { %v899_v17 = vmax.f32 %v898_v47, %v2521_v8  ;;  %v2526_v18 = vsel %vm2510_vm5, %v599_v12, -1e+30  ;;  %v354_v40 = vpop.permute.xlu1 %353  ;;  %v350_v5 = vpop.permute.xlu0 %349 }
 0x18a   :  { %v878_v14 = vmax.f32 %v877_v15, %v2526_v18  ;;  %v617_v36 = vmax.f32 %v489_v7, %v553_v19  ;;  %v505_v11 = vadd.f32 %v2067_v33, %v354_v40  ;;  %v616_v29 = vmax.f32 %v488_v25, %v552_v56 }
 0x18b   :  { %v900_v38 = vrot.slane %v899_v17, 4  ;;  %v504_v50 = vadd.f32 %v2067_v33, %v350_v5 }
 0x18c   :  { %v879_v24 = vrot.slane %v878_v14, 4  ;;  %v569_v49 = vmul.f32 0.2, %v505_v11  ;;  %v2533_v12 = vsel %vm2190_vm14, %v617_v36, -1e+30 }
 0x18d   :  { %v901_v41 = vmax.f32 %v899_v17, %v900_v38  ;;  %v568_v62 = vmul.f32 0.2, %v504_v50  ;;  %v358_v47 = vpop.permute.xlu1 %357  ;;  %v291_v3 = vpop.permute.xlu0 %290  ;;  %3460 = vst [vmem:[#allocation18_spill] sm:$0xff] %v2533_v12  ;;  %v2539_v56 = vsel %vm2211_vm1, %v616_v29, -1e+30 }
 0x18e   :  { %v880_v34 = vmax.f32 %v878_v14, %v879_v24  ;;  %v506_v15 = vadd.f32 %v2067_v33, %v358_v47  ;;  %v490_v7 = vadd.f32 %v2065_v32, %v291_v3  ;;  %3461 = vst [vmem:[#allocation19_spill] sm:$0xff] %v2539_v56  ;;  %v633_v25 = vmax.f32 %v505_v11, %v569_v49 }
 0x18f   :  { %v902_v19 = vrot.slane %v901_v41, 2  ;;  %v632_v17 = vmax.f32 %v504_v50, %v568_v62  ;;  %v906_v29 = vmax.f32 %v2539_v56, %v2533_v12 }
 0x190   :  { %v881_v40 = vrot.slane %v880_v34, 2  ;;  %v570_v5 = vmul.f32 0.2, %v506_v15  ;;  %v554_v38 = vmul.f32 0.2, %v490_v7 }
 0x191   :  { %v903_v35 = vmax.f32 %v901_v41, %v902_v19  ;;  %v2543_v14 = vsel %vm2190_vm14, %v633_v25, -1e+30  ;;  %v2547_v36 = vsel %vm2211_vm1, %v632_v17, -1e+30  ;;  %v362_v3 = vpop.permute.xlu1 %361  ;;  %v295_v24 = vpop.permute.xlu0 %294  ;;  %vm1999_vm14 = vmmov 0  }
 0x192   :  { %3462 = vst [vmem:[#allocation20_spill] sm:$0xff] %v2543_v14  ;;  %v882_v47 = vmax.f32 %v880_v34, %v881_v40  ;;  %v634_v49 = vmax.f32 %v506_v15, %v570_v5  ;;  %v618_v62 = vmax.f32 %v490_v7, %v554_v38  ;;  %v2552_v50 = vadd.f32 %v2067_v33, %v362_v3 }
 0x193   :  { %v904_v11 = vrot.slane %v903_v35, 1  ;;  %v2555_v0 = vadd.f32 %v2065_v32, %v295_v24  ;;  %v927_v10 = vmax.f32 %v2547_v36, %v2543_v14  ;;  %v3359_v15 = vmov 0.0  }
 0x194   :  { %v883_v41 = vrot.slane %v882_v47, 1  ;;  %v2561_v19 = vsel %vm2218_vm2, %v634_v49, -1e+30  ;;  %v2565_v34 = vsel %vm2218_vm2, %v618_v62, -1e+30  ;;  %1691 = vmatprep.subr.mxu1 %v3359_v15  ;;  %1726 = vmatprep.subr.mxu0 %v3359_v15 }
 0x195   :  { %3463 = vst [vmem:[#allocation21_spill] sm:$0xff] %v2561_v19  ;;  %3464 = vst [vmem:[#allocation22_spill] sm:$0xff] %v2565_v34  ;;  %v905_v7 = vmax.f32 %v903_v35, %v904_v11  ;;  %v2570_v25 = vmax.f32 %v906_v29, %v2565_v34  ;;  %v366_v17 = vpop.permute.xlu1 %365  ;;  %v299_v40 = vpop.permute.xlu0 %298  ;;  %v2575_v38 = vmax.f32 %v927_v10, %v2561_v19  ;;  %v2578_v52 = vmul.f32 0.2, %v2552_v50 }
 0x196   :  { %v2572_v5 = vmax.f32 %v882_v47, %v883_v41  ;;  %v2581_v3 = vmul.f32 0.2, %v2555_v0  ;;  %v2587_v49 = vadd.f32 %v2067_v33, %v366_v17  ;;  %v2593_v41 = vadd.f32 %v2065_v32, %v299_v40 }
 0x197   :  { %v964_v24 = vsub.f32 %v2277_v51, %v905_v7  ;;  %v965_v35 = vsub.f32 %v2267_v4, %v905_v7  ;;  %v966_v29 = vsub.f32 %v2295_v27, %v905_v7  ;;  %v967_v47 = vsub.f32 %v2319_v2, %v905_v7 }
 0x198   :  { %v968_v62 = vsub.f32 %v2335_v22, %v905_v7  ;;  %v969_v11 = vsub.f32 %v2366_v42, %v905_v7  ;;  %v970_v10 = vsub.f32 %v2384_v60, %v905_v7  ;;  %v971_v51 = vsub.f32 %v2401_v43, %v905_v7 }
 0x199   :  { %v972_v4 = vsub.f32 %v2410_v45, %v905_v7  ;;  %v973_v27 = vsub.f32 %v2438_v53, %v905_v7  ;;  %v2599_v15 = vpop.permute.xlu1 %369  ;;  %v2601_v17 = vpop.permute.xlu0 %302  ;;  %v974_v2 = vsub.f32 %v2456_v13, %v905_v7  ;;  %v975_v22 = vsub.f32 %v2465_v37, %v905_v7 }
 0x19a   :  { %v976_v42 = vsub.f32 %v2481_v63, %v905_v7  ;;  %v977_v40 = vsub.f32 %v2491_v9, %v905_v7  ;;  %v978_v60 = vsub.f32 %v2503_v46, %v905_v7  ;;  %v1044_v34 = vmul.f32 1.442695, %v964_v24 }
 0x19b   :  { %v1046_v43 = vmul.f32 1.442695, %v965_v35  ;;  %v1048_v12 = vmul.f32 1.442695, %v966_v29  ;;  %v979_v45 = vsub.f32 %v2521_v8, %v905_v7  ;;  %v1050_v53 = vmul.f32 1.442695, %v967_v47 }
 0x19c   :  { %v1052_v56 = vmul.f32 1.442695, %v968_v62  ;;  %v948_v19 = vsub.f32 %v2281_v23, %v2572_v5  ;;  %1838 = vpow2.f32 %v1044_v34  ;;  %v1054_v13 = vmul.f32 1.442695, %v969_v11 }
 0x19d   :  { %v1056_v14 = vmul.f32 1.442695, %v970_v10  ;;  %v949_v37 = vsub.f32 %v2285_v26, %v2572_v5  ;;  %v2613_v63 = vpop.permute.xlu1 %373  ;;  %v2615_v9 = vpop.permute.xlu0 %306  ;;  %1840 = vpow2.f32 %v1046_v43  ;;  %v1058_v46 = vmul.f32 1.442695, %v971_v51 }
 0x19e   :  { %v1060_v24 = vmul.f32 1.442695, %v972_v4  ;;  %v1062_v35 = vmul.f32 1.442695, %v973_v27  ;;  %1842 = vpow2.f32 %v1048_v12  ;;  %v1064_v8 = vmul.f32 1.442695, %v974_v2 }
 0x19f   :  { %v1066_v7 = vmul.f32 1.442695, %v975_v22  ;;  %v1068_v29 = vmul.f32 1.442695, %v976_v42  ;;  %1844 = vpow2.f32 %v1050_v53  ;;  %v1070_v23 = vmul.f32 1.442695, %v977_v40 }
 0x1a0   :  { %v1072_v34 = vmul.f32 1.442695, %v978_v60  ;;  %v2617_v47 = vmul.f32 1.442695, %v979_v45  ;;  %1846 = vpow2.f32 %v1052_v56  ;;  %v950_v26 = vsub.f32 %v2299_v28, %v2572_v5 }
 0x1a1   :  { %v951_v62 = vsub.f32 %v2331_v21, %v2572_v5  ;;  %v952_v11 = vsub.f32 %v2361_v54, %v2572_v5  ;;  %v2625_v10 = vpop.permute.xlu1 %377  ;;  %v2627_v12 = vpop.permute.xlu0 %310  ;;  %1848 = vpow2.f32 %v1054_v13  ;;  %v953_v51 = vsub.f32 %v2370_v39, %v2572_v5 }
 0x1a2   :  { %v954_v56 = vsub.f32 %v2396_v61, %v2572_v5  ;;  %v955_v28 = vsub.f32 %v2406_v55, %v2572_v5  ;;  %1850 = vpow2.f32 %v1056_v14  ;;  %v956_v21 = vsub.f32 %v2424_v6, %v2572_v5 }
 0x1a3   :  { %v957_v54 = vsub.f32 %v2444_v59, %v2572_v5  ;;  %v958_v4 = vsub.f32 %v2460_v16, %v2572_v5  ;;  %1852 = vpow2.f32 %v1058_v46  ;;  %v959_v39 = vsub.f32 %v2469_v20, %v2572_v5 }
 0x1a4   :  { %v960_v61 = vsub.f32 %v2487_v30, %v2572_v5  ;;  %v961_v55 = vsub.f32 %v2497_v1, %v2572_v5  ;;  %1854 = vpow2.f32 %v1060_v24  ;;  %v962_v6 = vsub.f32 %v2508_v31, %v2572_v5 }
 0x1a5   :  { %v963_v59 = vsub.f32 %v2526_v18, %v2572_v5  ;;  %v1012_v14 = vmul.f32 1.442695, %v948_v19  ;;  %v2651_v27 = vpop.permute.xlu1 %381  ;;  %v2653_v16 = vpop.permute.xlu0 %314  ;;  %1856 = vpow2.f32 %v1062_v35  ;;  %v1014_v20 = vmul.f32 1.442695, %v949_v37 }
 0x1a6   :  { %v1016_v2 = vmul.f32 1.442695, %v950_v26  ;;  %v1018_v22 = vmul.f32 1.442695, %v951_v62  ;;  %1858 = vpow2.f32 %v1064_v8  ;;  %v1020_v30 = vmul.f32 1.442695, %v952_v11 }
 0x1a7   :  { %v1022_v42 = vmul.f32 1.442695, %v953_v51  ;;  %v2655_v1 = vmul.f32 1.442695, %v954_v56  ;;  %1860 = vpow2.f32 %v1066_v7  ;;  %v2657_v40 = vmul.f32 1.442695, %v955_v28 }
 0x1a8   :  { %v2659_v31 = vmul.f32 1.442695, %v956_v21  ;;  %v2661_v18 = vmul.f32 1.442695, %v957_v54  ;;  %1862 = vpow2.f32 %v1068_v29  ;;  %v2663_v19 = vmul.f32 1.442695, %v958_v4 }
 0x1a9   :  { %v2665_v5 = vmul.f32 1.442695, %v959_v39  ;;  %v2667_v60 = vmul.f32 1.442695, %v960_v61  ;;  %v2669_v43 = vpop.permute.xlu1 %385  ;;  %v2671_v45 = vpop.eup %1838  ;;  %v2673_v53 = vmul.f32 1.442695, %v961_v55  ;;  %v635_v37 = vmax.f32 %v2552_v50, %v2578_v52 }
 0x1aa   :  { %3465 = vst [vmem:[#allocation23_spill] sm:$0xff] %v2671_v45  ;;  %v2675_v13 = vmul.f32 1.442695, %v962_v6  ;;  %v619_v46 = vmax.f32 %v2555_v0, %v2581_v3  ;;  %v2681_v24 = vpop.permute.xlu0 %318  ;;  %v2683_v35 = vpop.eup %1840  ;;  %1864 = vpow2.f32 %v1070_v23  ;;  %v572_v8 = vmul.f32 0.2, %v2587_v49 }
 0x1ab   :  { %3466 = vst [vmem:[#allocation24_spill] sm:$0xff] %v2683_v35  ;;  %v556_v7 = vmul.f32 0.2, %v2593_v41  ;;  %v509_v29 = vadd.f32 %v2067_v33, %v2599_v15  ;;  %v2689_v26 = vpop.eup %1842  ;;  %1866 = vpow2.f32 %v1072_v34  ;;  %v1161_v50 = vadd.f32 %v2683_v35, %v2671_v45 }
 0x1ac   :  { %3467 = vst [vmem:[#allocation25_spill] sm:$0xff] %v2689_v26  ;;  %v2695_v0 = vsel %vm2241_vm6, %v635_v37, -1e+30  ;;  %v2699_v52 = vsel %vm2241_vm6, %v619_v46, -1e+30  ;;  %v2701_v3 = vpop.eup %1844  ;;  %1868 = vpow2.f32 %v1012_v14  ;;  %v636_v34 = vmax.f32 %v2587_v49, %v572_v8 }
 0x1ad   :  { %3468 = vst [vmem:[#allocation26_spill] sm:$0xff] %v2701_v3  ;;  %v2703_v23 = vmul.f32 1.442695, %v963_v59  ;;  %v908_v15 = vmax.f32 %v2570_v25, %v2699_v52  ;;  %v2708_v62 = vpop.eup %1846  ;;  %v1162_v11 = vadd.f32 %v2689_v26, %v1161_v50  ;;  %1870 = vpow2.f32 %v1014_v20  ;;  %v2721_v21 = vpop.permute.xlu1 %389 }
 0x1ae   :  { %3469 = vst [vmem:[#allocation27_spill] sm:$0xff] %v2708_v62  ;;  %v620_v51 = vmax.f32 %v2593_v41, %v556_v7  ;;  %v573_v44 = vmul.f32 0.2, %v509_v29  ;;  %v2712_v56 = vpop.eup %1848  ;;  %1872 = vpow2.f32 %v2617_v47  ;;  %v929_v28 = vmax.f32 %v2575_v38, %v2695_v0  ;;  %v2734_v47 = vpop.permute.xlu0 %322 }
 0x1af   :  { %3470 = vst [vmem:[#allocation28_spill] sm:$0xff] %v2712_v56  ;;  %v493_v25 = vadd.f32 %v2065_v32, %v2601_v17  ;;  %v510_v49 = vadd.f32 %v2067_v33, %v2613_v63  ;;  %v2723_v54 = vpop.eup %1850  ;;  %v1163_v41 = vadd.f32 %v2701_v3, %v1162_v11  ;;  %1874 = vpow2.f32 %v1016_v2 }
 0x1b0   :  { %3471 = vst [vmem:[#allocation29_spill] sm:$0xff] %v2723_v54  ;;  %v2728_v4 = vsel %vm2252_vm7, %v636_v34, -1e+30  ;;  %v2732_v38 = vsel %vm2252_vm7, %v620_v51, -1e+30  ;;  %v2736_v17 = vpop.eup %1852  ;;  %1876 = vpow2.f32 %v1018_v22  ;;  %v637_v39 = vmax.f32 %v509_v29, %v573_v44 }
 0x1b1   :  { %3472 = vst [vmem:[#allocation30_spill] sm:$0xff] %v2736_v17  ;;  %v909_v63 = vmax.f32 %v908_v15, %v2732_v38  ;;  %v557_v61 = vmul.f32 0.2, %v493_v25  ;;  %v2739_v55 = vpop.eup %1854  ;;  %v1164_v6 = vadd.f32 %v2708_v62, %v1163_v41  ;;  %1878 = vpow2.f32 %v1020_v30 }
 0x1b2   :  { %v574_v59 = vmul.f32 0.2, %v510_v49  ;;  %v494_v48 = vadd.f32 %v2065_v32, %v2615_v9  ;;  %v2744_v14 = vpop.eup %1856  ;;  %1880 = vpow2.f32 %v1022_v42  ;;  %v2748_v20 = vsel %vm2287_vm8, %v637_v39, -1e+30  ;;  %v2772_v11 = vpop.permute.xlu0 %326 }
 0x1b3   :  { %v621_v2 = vmax.f32 %v493_v25, %v557_v61  ;;  %v511_v22 = vadd.f32 %v2067_v33, %v2625_v10  ;;  %v2752_v37 = vpop.eup %1858  ;;  %v1165_v46 = vadd.f32 %v2712_v56, %v1164_v6  ;;  %1882 = vpow2.f32 %v2655_v1  ;;  %v2764_v10 = vpop.permute.xlu1 %393 }
 0x1b4   :  { %3473 = vst [vmem:[#allocation31_spill] sm:$0xff] %v2752_v37  ;;  %v930_v30 = vmax.f32 %v929_v28, %v2728_v4  ;;  %v638_v9 = vmax.f32 %v510_v49, %v574_v59  ;;  %v2757_v8 = vpop.eup %1860  ;;  %1884 = vpow2.f32 %v2657_v40  ;;  %v558_v7 = vmul.f32 0.2, %v494_v48 }
 0x1b5   :  { %3474 = vst [vmem:[#allocation32_spill] sm:$0xff] %v2757_v8  ;;  %v2762_v42 = vsel %vm2287_vm8, %v621_v2, -1e+30  ;;  %v575_v29 = vmul.f32 0.2, %v511_v22  ;;  %v2766_v50 = vpop.eup %1862  ;;  %v1166_v15 = vadd.f32 %v2723_v54, %v1165_v46  ;;  %1886 = vpow2.f32 %v2659_v31 }
 0x1b6   :  { %v931_v1 = vmax.f32 %v930_v30, %v2748_v20  ;;  %v910_v34 = vmax.f32 %v909_v63, %v2762_v42  ;;  %1888 = vpow2.f32 %v2661_v18  ;;  %v2777_v57 = vsel %vm2304_vm9, %v638_v9, -1e+30  ;;  %v331_v30 = vpop.permute.xlu0 %330 }
 0x1b7   :  { %v622_v40 = vmax.f32 %v494_v48, %v558_v7  ;;  %v639_v51 = vmax.f32 %v511_v22, %v575_v29  ;;  %v2779_v44 = vpop.eup %1864  ;;  %v1167_v28 = vadd.f32 %v2736_v17, %v1166_v15  ;;  %1890 = vpow2.f32 %v2663_v19  ;;  %v398_v48 = vpop.permute.xlu1 %397 }
 0x1b8   :  { %v495_v31 = vadd.f32 %v2065_v32, %v2627_v12  ;;  %v512_v25 = vadd.f32 %v2067_v33, %v2651_v27  ;;  %v2787_v49 = vpop.eup %1866  ;;  %1892 = vpow2.f32 %v2665_v5  ;;  %v496_v19 = vadd.f32 %v2065_v32, %v2653_v16 }
 0x1b9   :  { %v2792_v18 = vsel %vm2304_vm9, %v622_v40, -1e+30  ;;  %v2796_v63 = vsel %vm2323_vm11, %v639_v51, -1e+30  ;;  %v2800_v39 = vpop.eup %1868  ;;  %v1168_v12 = vadd.f32 %v2739_v55, %v1167_v28  ;;  %1894 = vpow2.f32 %v2667_v60 }
 0x1ba   :  { %3476 = vst [vmem:[#allocation9_spill] sm:$0xff] %v2800_v39  ;;  %v932_v27 = vmax.f32 %v931_v1, %v2777_v57  ;;  %v911_v5 = vmax.f32 %v910_v34, %v2792_v18  ;;  %v2806_v58 = vpop.eup %1870  ;;  %1896 = vpow2.f32 %v2673_v53  ;;  %v559_v61 = vmul.f32 0.2, %v495_v31 }
 0x1bb   :  { %3477 = vst [vmem:[#allocation33_spill] sm:$0xff] %v2806_v58  ;;  %v576_v6 = vmul.f32 0.2, %v512_v25  ;;  %v560_v59 = vmul.f32 0.2, %v496_v19  ;;  %v2809_v2 = vpop.eup %1872  ;;  %v1169_v16 = vadd.f32 %v2744_v14, %v1168_v12  ;;  %v1140_v22 = vadd.f32 %v2806_v58, %v2800_v39 }
 0x1bc   :  { %v933_v60 = vmax.f32 %v932_v27, %v2796_v63  ;;  %v513_v46 = vadd.f32 %v2067_v33, %v2669_v43  ;;  %v2817_v9 = vpop.eup %1874  ;;  %v623_v53 = vmax.f32 %v495_v31, %v559_v61  ;;  %v497_v15 = vadd.f32 %v2065_v32, %v2681_v24 }
 0x1bd   :  { %3478 = vst [vmem:[#allocation34_spill] sm:$0xff] %v2817_v9  ;;  %v640_v7 = vmax.f32 %v512_v25, %v576_v6  ;;  %v624_v29 = vmax.f32 %v496_v19, %v560_v59  ;;  %v2821_v1 = vpop.eup %1876  ;;  %v1170_v34 = vadd.f32 %v2752_v37, %v1169_v16  ;;  %v1141_v40 = vadd.f32 %v2817_v9, %v1140_v22 }
 0x1be   :  { %3479 = vst [vmem:[#allocation35_spill] sm:$0xff] %v2821_v1  ;;  %v577_v51 = vmul.f32 0.2, %v513_v46  ;;  %v514_v28 = vadd.f32 %v2067_v33, %v2721_v21  ;;  %v2827_v43 = vpop.eup %1878  ;;  %v2831_v31 = vsel %vm2323_vm11, %v623_v53, -1e+30  ;;  %v498_v12 = vadd.f32 %v2065_v32, %v2734_v47 }
 0x1bf   :  { %3480 = vst [vmem:[#allocation36_spill] sm:$0xff] %v2827_v43  ;;  %v2835_v19 = vsel %vm2339_vm12, %v640_v7, -1e+30  ;;  %v2839_v24 = vsel %vm2339_vm12, %v624_v29, -1e+30  ;;  %v2843_v27 = vpop.eup %1880  ;;  %v1171_v21 = vadd.f32 %v2757_v8, %v1170_v34  ;;  %v1142_v61 = vadd.f32 %v2821_v1, %v1141_v40  ;;  %v402_v29 = vpop.permute.xlu1 %401 }
 0x1c0   :  { %3482 = vst [vmem:[#allocation10_spill] sm:$0xff] %v2843_v27  ;;  %v912_v41 = vmax.f32 %v911_v5, %v2831_v31  ;;  %v934_v6 = vmax.f32 %v933_v60, %v2835_v19  ;;  %v2849_v59 = vpop.eup %1882  ;;  %v641_v16 = vmax.f32 %v513_v46, %v577_v51  ;;  %v561_v22 = vmul.f32 0.2, %v497_v15  ;;  %v335_v40 = vpop.permute.xlu0 %334 }
 0x1c1   :  { %3483 = vst [vmem:[#allocation37_spill] sm:$0xff] %v2849_v59  ;;  %v578_v53 = vmul.f32 0.2, %v514_v28  ;;  %v562_v7 = vmul.f32 0.2, %v498_v12  ;;  %v2851_v25 = vpop.eup %1884  ;;  %v1172_v47 = vadd.f32 %v2766_v50, %v1171_v21  ;;  %v1143_v45 = vadd.f32 %v2827_v43, %v1142_v61 }
 0x1c2   :  { %3484 = vst [vmem:[#allocation38_spill] sm:$0xff] %v2851_v25  ;;  %v913_v34 = vmax.f32 %v912_v41, %v2839_v24  ;;  %v515_v5 = vadd.f32 %v2067_v33, %v2764_v10  ;;  %v2858_v60 = vpop.eup %1886  ;;  %v2862_v46 = vsel %vm2349_vm13, %v641_v16, -1e+30  ;;  %v625_v51 = vmax.f32 %v497_v15, %v561_v22 }
 0x1c3   :  { %v642_v35 = vmax.f32 %v514_v28, %v578_v53  ;;  %v626_v58 = vmax.f32 %v498_v12, %v562_v7  ;;  %v2864_v26 = vpop.eup %1888  ;;  %v1173_v21 = vadd.f32 %v2779_v44, %v1172_v47  ;;  %1898 = vpow2.f32 %v2675_v13 }
 0x1c4   :  { %v1144_v61 = vadd.f32 %v2843_v27, %v1143_v45  ;;  %v579_v41 = vmul.f32 0.2, %v515_v5  ;;  %v2869_v10 = vpop.eup %1890  ;;  %v935_v9 = vmax.f32 %v934_v6, %v2862_v46  ;;  %v2874_v16 = vsel %vm2349_vm13, %v625_v51, -1e+30  ;;  %v406_v51 = vpop.permute.xlu1 %405 }
 0x1c5   :  { %3486 = vst [vmem:[#allocation11_spill] sm:$0xff] %v2869_v10  ;;  %v2878_v28 = vsel %vm2377_vm15, %v626_v58, -1e+30  ;;  %v499_v12 = vadd.f32 %v2065_v32, %v2772_v11  ;;  %v2882_v22 = vpop.eup %1892  ;;  %v1174_v45 = vadd.f32 %v2787_v49, %v1173_v21  ;;  %v914_v53 = vmax.f32 %v913_v34, %v2874_v16  ;;  %v339_v15 = vpop.permute.xlu0 %338 }
 0x1c6   :  { %3488 = vst [vmem:[#allocation12_spill] sm:$0xff] %v2882_v22  ;;  %v1145_v13 = vadd.f32 %v2849_v59, %v1144_v61  ;;  %v2889_v39 = vsel %vm2377_vm15, %v642_v35, -1e+30  ;;  %v2891_v6 = vpop.eup %1894  ;;  %v643_v7 = vmax.f32 %v515_v5, %v579_v41  ;;  %v516_v47 = vadd.f32 %v2067_v33, %v398_v48 }
 0x1c7   :  { %v563_v58 = vmul.f32 0.2, %v499_v12  ;;  %v500_v11 = vadd.f32 %v2065_v32, %v331_v30  ;;  %v2895_v3 = vpop.eup %1896  ;;  %v1175_v21 = vadd.f32 %v2809_v2, %v1174_v45  ;;  %v915_v34 = vmax.f32 %v914_v53, %v2878_v28 }
 0x1c8   :  { %v1146_v61 = vadd.f32 %v2851_v25, %v1145_v13  ;;  %v517_v35 = vadd.f32 %v2067_v33, %v402_v29  ;;  %1900 = vpow2.f32 %v2703_v23  ;;  %v580_v41 = vmul.f32 0.2, %v516_v47 }
 0x1c9   :  { %v627_v5 = vmax.f32 %v499_v12, %v563_v58  ;;  %v564_v1 = vmul.f32 0.2, %v500_v11  ;;  %v936_v30 = vmax.f32 %v935_v9, %v2889_v39  ;;  %v2906_v56 = vsel %vm2388_vm0, %v643_v7, -1e+30 }
 0x1ca   :  { %v1147_v48 = vadd.f32 %v2858_v60, %v1146_v61  ;;  %v581_v45 = vmul.f32 0.2, %v517_v35  ;;  %v644_v29 = vmax.f32 %v516_v47, %v580_v41  ;;  %v501_v23 = vadd.f32 %v2065_v32, %v335_v40 }
 0x1cb   :  { %v2910_v13 = vsel %vm2388_vm0, %v627_v5, -1e+30  ;;  %v628_v53 = vmax.f32 %v500_v11, %v564_v1  ;;  %v1176_v12 = vrot.slane %v1175_v21, 4  ;;  %v518_v47 = vadd.f32 %v2067_v33, %v406_v51  ;;  %v410_v1 = vpop.permute.xlu1 %409 }
 0x1cc   :  { %v1148_v58 = vadd.f32 %v2864_v26, %v1147_v48  ;;  %v916_v61 = vmax.f32 %v915_v34, %v2910_v13  ;;  %v645_v54 = vmax.f32 %v517_v35, %v581_v45  ;;  %v2917_v37 = vsel %vm2414_vm3, %v644_v29, -1e+30  ;;  %v343_v34 = vpop.permute.xlu0 %342 }
 0x1cd   :  { %v2921_v7 = vsel %vm2414_vm3, %v628_v53, -1e+30  ;;  %v565_v62 = vmul.f32 0.2, %v501_v23  ;;  %v937_v11 = vmax.f32 %v936_v30, %v2906_v56  ;;  %v582_v45 = vmul.f32 0.2, %v518_v47 }
 0x1ce   :  { %v1149_v40 = vadd.f32 %v2869_v10, %v1148_v58  ;;  %v917_v5 = vmax.f32 %v916_v61, %v2921_v7  ;;  %v2929_v41 = vsel %vm2428_vm4, %v645_v54, -1e+30  ;;  %v502_v29 = vadd.f32 %v2065_v32, %v339_v15 }
 0x1cf   :  { %v629_v48 = vmax.f32 %v501_v23, %v565_v62  ;;  %v1177_v53 = vadd.f32 %v1176_v12, %v1175_v21  ;;  %v938_v51 = vmax.f32 %v937_v11, %v2917_v37  ;;  %v519_v58 = vadd.f32 %v2067_v33, %v410_v1 }
 0x1d0   :  { %v1150_v9 = vadd.f32 %v2882_v22, %v1149_v40  ;;  %v2935_v10 = vpop.eup %1898  ;;  %v646_v61 = vmax.f32 %v518_v47, %v582_v45  ;;  %v566_v54 = vmul.f32 0.2, %v502_v29  ;;  %v503_v23 = vadd.f32 %v2065_v32, %v343_v34 }
 0x1d1   :  { %v2939_v30 = vsel %vm2428_vm4, %v629_v48, -1e+30  ;;  %v939_v21 = vmax.f32 %v938_v51, %v2929_v41  ;;  %v583_v12 = vmul.f32 0.2, %v519_v58  ;;  %v1178_v35 = vrot.slane %v1177_v53, 2 }
 0x1d2   :  { %v1151_v62 = vadd.f32 %v2891_v6, %v1150_v9  ;;  %v918_v15 = vmax.f32 %v917_v5, %v2939_v30  ;;  %v2947_v33 = vsel %vm2475_vm10, %v646_v61, -1e+30  ;;  %v630_v1 = vmax.f32 %v502_v29, %v566_v54 }
 0x1d3   :  { %v567_v11 = vmul.f32 0.2, %v503_v23  ;;  %v647_v47 = vmax.f32 %v519_v58, %v583_v12  ;;  %v3493_v45 = vmov 0.0   ;;  %v940_v32 = vmax.f32 %v939_v21, %v2947_v33 }
 0x1d4   :  { %v1152_v48 = vadd.f32 %v2895_v3, %v1151_v62  ;;  %1723 = vmatprep.mubr.msk.f32.mxu1 %vm1999_vm14, %v3493_v45  ;;  %v2955_v5 = vsel %vm2475_vm10, %v630_v1, -1e+30  ;;  %1758 = vmatprep.mubr.msk.f32.mxu0 %vm1999_vm14, %v3493_v45 }
 0x1d5   :  { %v631_v34 = vmax.f32 %v503_v23, %v567_v11  ;;  %v2959_v29 = vpop.eup %1900  ;;  %v919_v51 = vmax.f32 %v918_v15, %v2955_v5  ;;  %v2965_v61 = vsel %vm2510_vm5, %v647_v47, -1e+30  ;;  %v1179_v23 = vadd.f32 %v1178_v35, %v1177_v53 }
 0x1d6   :  { %v1153_v9 = vadd.f32 %v2935_v10, %v1152_v48  ;;  %v941_v54 = vmax.f32 %v940_v32, %v2965_v61 }
 0x1d7   :  { %v2970_v62 = vsel %vm2510_vm5, %v631_v34, -1e+30  ;;  %v1180_v15 = vrot.slane %v1179_v23, 1 }
 0x1d8   :  { %v1154_v21 = vadd.f32 %v2959_v29, %v1153_v9  ;;  %v920_v12 = vmax.f32 %v919_v51, %v2970_v62  ;;  %v942_v40 = vrot.slane %v941_v54, 4 }
 0x1d9   :  { %v1181_v22 = vadd.f32 %v1180_v15, %v1179_v23 }
 0x1da   :  { %v1155_v1 = vrot.slane %v1154_v21, 4  ;;  %v921_v11 = vrot.slane %v920_v12, 4  ;;  %v943_v48 = vmax.f32 %v941_v54, %v942_v40 }
 0x1db   :  { %v1225_v51 = vadd.f32 1e-16, %v1181_v22 }
 0x1dc   :  { %v1156_v43 = vadd.f32 %v1155_v1, %v1154_v21  ;;  %v922_v27 = vmax.f32 %v920_v12, %v921_v11  ;;  %v944_v47 = vrot.slane %v943_v48, 2  ;;  %v3495_v21 = vld [vmem:[#allocation20_spill] sm:$0xff]  ;;  %v3496_v1 = vld [vmem:[#allocation21_spill] sm:$0xff] }
 0x1dd   :  { %1902 = vrcp.f32 %v1225_v51 }
 0x1de   :  { %v1157_v8 = vrot.slane %v1156_v43, 2  ;;  %v923_v59 = vrot.slane %v922_v27, 2  ;;  %v945_v32 = vmax.f32 %v943_v48, %v944_v47 }
 0x1e0   :  { %v1158_v58 = vadd.f32 %v1157_v8, %v1156_v43  ;;  %v924_v34 = vmax.f32 %v922_v27, %v923_v59  ;;  %v946_v17 = vrot.slane %v945_v32, 1  ;;  %v3497_v59 = vld [vmem:[#allocation19_spill] sm:$0xff] }
 0x1e2   :  { %v1159_v53 = vrot.slane %v1158_v58, 1  ;;  %v925_v35 = vrot.slane %v924_v34, 1  ;;  %v2974_v9 = vmax.f32 %v945_v32, %v946_v17 }
 0x1e4   :  { %v1160_v25 = vadd.f32 %v1159_v53, %v1158_v58  ;;  %v996_v54 = vsub.f32 %v2547_v36, %v2974_v9  ;;  %v997_v12 = vsub.f32 %v3495_v21, %v2974_v9  ;;  %v998_v11 = vsub.f32 %v3496_v1, %v2974_v9  ;;  %v3498_v58 = vld [vmem:[#allocation18_spill] sm:$0xff] }
 0x1e5   :  { %v2982_v23 = vmax.f32 %v924_v34, %v925_v35  ;;  %v999_v8 = vsub.f32 %v2695_v0, %v2974_v9  ;;  %v1000_v27 = vsub.f32 %v2728_v4, %v2974_v9  ;;  %v1002_v15 = vsub.f32 %v2777_v57, %v2974_v9  ;;  %v3499_v57 = vld [vmem:[#allocation22_spill] sm:$0xff] }
 0x1e6   :  { %v1224_v40 = vadd.f32 1e-16, %v1160_v25  ;;  %v1108_v17 = vmul.f32 1.442695, %v996_v54  ;;  %v1110_v43 = vmul.f32 1.442695, %v997_v12  ;;  %v1001_v25 = vsub.f32 %v2748_v20, %v2974_v9 }
 0x1e7   :  { %v1112_v36 = vmul.f32 1.442695, %v998_v11  ;;  %v980_v22 = vsub.f32 %v3497_v59, %v2982_v23  ;;  %v1114_v48 = vmul.f32 1.442695, %v999_v8  ;;  %v1003_v0 = vsub.f32 %v2796_v63, %v2974_v9 }
 0x1e8   :  { %1904 = vrcp.f32 %v1224_v40  ;;  %v1004_v47 = vsub.f32 %v2835_v19, %v2974_v9  ;;  %v1005_v4 = vsub.f32 %v2862_v46, %v2974_v9  ;;  %v1006_v32 = vsub.f32 %v2889_v39, %v2974_v9 }
 0x1e9   :  { %1906 = vpow2.f32 %v1108_v17  ;;  %v1116_v20 = vmul.f32 1.442695, %v1000_v27  ;;  %v981_v34 = vsub.f32 %v3498_v58, %v2982_v23  ;;  %v1118_v53 = vmul.f32 1.442695, %v1001_v25 }
 0x1ea   :  { %1908 = vpow2.f32 %v1110_v43  ;;  %v982_v35 = vsub.f32 %v3499_v57, %v2982_v23  ;;  %v983_v63 = vsub.f32 %v2699_v52, %v2982_v23  ;;  %v984_v19 = vsub.f32 %v2732_v38, %v2982_v23  ;;  %v3038_v59 = vpop.eup %1902 }
 0x1eb   :  { %1910 = vpow2.f32 %v1112_v36  ;;  %v985_v46 = vsub.f32 %v2762_v42, %v2982_v23  ;;  %v986_v39 = vsub.f32 %v2792_v18, %v2982_v23  ;;  %v987_v51 = vsub.f32 %v2831_v31, %v2982_v23 }
 0x1ec   :  { %1912 = vpow2.f32 %v1114_v48  ;;  %v1120_v54 = vmul.f32 1.442695, %v1002_v15  ;;  %v988_v21 = vsub.f32 %v2839_v24, %v2982_v23  ;;  %v989_v52 = vsub.f32 %v2874_v16, %v2982_v23 }
 0x1ed   :  { %v990_v38 = vsub.f32 %v2878_v28, %v2982_v23  ;;  %1914 = vpow2.f32 %v1116_v20  ;;  %v991_v42 = vsub.f32 %v2910_v13, %v2982_v23  ;;  %v992_v12 = vsub.f32 %v2921_v7, %v2982_v23 }
 0x1ee   :  { %v993_v40 = vsub.f32 %v2939_v30, %v2982_v23  ;;  %v1007_v1 = vsub.f32 %v2906_v56, %v2974_v9  ;;  %v1122_v11 = vmul.f32 1.442695, %v1003_v0  ;;  %v994_v8 = vsub.f32 %v2955_v5, %v2982_v23 }
 0x1ef   :  { %v995_v17 = vsub.f32 %v2970_v62, %v2982_v23  ;;  %v1008_v43 = vsub.f32 %v2917_v37, %v2974_v9  ;;  %v1009_v27 = vsub.f32 %v2929_v41, %v2974_v9  ;;  %1916 = vpow2.f32 %v1118_v53 }
 0x1f0   :  { %v1124_v36 = vmul.f32 1.442695, %v1004_v47  ;;  %v1010_v56 = vsub.f32 %v2947_v33, %v2974_v9  ;;  %v1126_v25 = vmul.f32 1.442695, %v1005_v4  ;;  %1918 = vpow2.f32 %v1120_v54 }
 0x1f1   :  { %v1128_v15 = vmul.f32 1.442695, %v1006_v32  ;;  %v1011_v0 = vsub.f32 %v2965_v61, %v2974_v9  ;;  %1920 = vpow2.f32 %v1122_v11  ;;  %v1130_v37 = vmul.f32 1.442695, %v1007_v1 }
 0x1f2   :  { %v1076_v20 = vmul.f32 1.442695, %v980_v22  ;;  %1922 = vpow2.f32 %v1124_v36  ;;  %v1132_v41 = vmul.f32 1.442695, %v1008_v43  ;;  %v1134_v47 = vmul.f32 1.442695, %v1009_v27 }
 0x1f3   :  { %v1078_v53 = vmul.f32 1.442695, %v981_v34  ;;  %1924 = vpow2.f32 %v1126_v25  ;;  %v3050_v33 = vmul.f32 1.442695, %v1010_v56  ;;  %v1263_v32 = vmul.f32 %v3038_v59, %v2809_v2  ;;  %v3501_v25 = vld [vmem:[#allocation30_spill] sm:$0xff] }
 0x1f4   :  { %1926 = vpow2.f32 %v1128_v15  ;;  %v1080_v54 = vmul.f32 1.442695, %v982_v35  ;;  %v1082_v1 = vmul.f32 1.442695, %v983_v63  ;;  %v1084_v34 = vmul.f32 1.442695, %v984_v19 }
 0x1f5   :  { %v3042_v48 = vpop.eup %1904  ;;  %1928 = vpow2.f32 %v1076_v20  ;;  %1727 = vmatpush3.msra.mxu0 %v1263_v32  ;;  %v1261_v63 = vmul.f32 %v3038_v59, %v2779_v44  ;;  %v1086_v27 = vmul.f32 1.442695, %v985_v46  ;;  %v1255_v15 = vmul.f32 %v3038_v59, %v3501_v25  ;;  %v3510_v25 = vld [vmem:[#allocation28_spill] sm:$0xff] }
 0x1f6   :  { %v3046_v58 = vpop.eup %1906  ;;  %v1247_v4 = vmul.f32 %v3042_v48, %v2959_v29  ;;  %v1246_v43 = vmul.f32 %v3042_v48, %v2935_v10  ;;  %v1262_v29 = vmul.f32 %v3038_v59, %v2787_v49  ;;  %1930 = vpow2.f32 %v1078_v53  ;;  %1728 = vmatprep.subr.mxu0 %v3493_v45 }
 0x1f7   :  { %v3048_v57 = vpop.eup %1908  ;;  %v1245_v35 = vmul.f32 %v3042_v48, %v2895_v3  ;;  %v1244_v49 = vmul.f32 %v3042_v48, %v2891_v6  ;;  %v1260_v10 = vmul.f32 %v3038_v59, %v2766_v50  ;;  %v1241_v36 = vmul.f32 %v3042_v48, %v2864_v26  ;;  %v3500_v50 = vld [vmem:[#allocation38_spill] sm:$0xff] }
 0x1f8   :  { %v1203_v22 = vadd.f32 %v3048_v57, %v3046_v58  ;;  %v3058_v11 = vpop.eup %1910  ;;  %1692 = vmatpush3.msra.mxu1 %v1247_v4  ;;  %1729 = vmatpush3.msra.mxu0 %v1262_v29  ;;  %1932 = vpow2.f32 %v1080_v54  ;;  %v1257_v3 = vmul.f32 %v3038_v59, %v2744_v14  ;;  %v1240_v44 = vmul.f32 %v3042_v48, %v2858_v60  ;;  %v3502_v14 = vld [vmem:[#allocation12_spill] sm:$0xff] }
 0x1f9   :  { %1693 = vmatprep.subr.mxu1 %v3493_v45  ;;  %v3071_v19 = vpop.eup %1912  ;;  %1730 = vmatprep.subr.mxu0 %v3493_v45  ;;  %1934 = vpow2.f32 %v1130_v37  ;;  %v1256_v26 = vmul.f32 %v3038_v59, %v2739_v55  ;;  %v1239_v46 = vmul.f32 %v3042_v48, %v3500_v50  ;;  %v1243_v60 = vmul.f32 %v3042_v48, %v3502_v14  ;;  %v3503_v37 = vld [vmem:[#allocation37_spill] sm:$0xff]  ;;  %v3504_v4 = vld [vmem:[#allocation32_spill] sm:$0xff] }
 0x1fa   :  { %v1204_v2 = vadd.f32 %v3058_v11, %v1203_v22  ;;  %1694 = vmatpush3.msra.mxu1 %v1246_v43  ;;  %v3086_v6 = vpop.eup %1914  ;;  %1731 = vmatpush3.msra.mxu0 %v1261_v63  ;;  %1936 = vpow2.f32 %v1082_v1  ;;  %v3101_v53 = vmul.f32 %v3042_v48, %v3503_v37  ;;  %v1259_v32 = vmul.f32 %v3038_v59, %v3504_v4  ;;  %v3505_v22 = vld [vmem:[#allocation10_spill] sm:$0xff]  ;;  %v3506_v1 = vld [vmem:[#allocation36_spill] sm:$0xff]  ;;  %v3507_v63 = vld [vmem:[#allocation11_spill] sm:$0xff] }
 0x1fb   :  { %1695 = vmatprep.subr.mxu1 %v3493_v45  ;;  %1732 = vmatprep.subr.mxu0 %v3493_v45  ;;  %1938 = vpow2.f32 %v1132_v41  ;;  %v3109_v54 = vmul.f32 %v3042_v48, %v3505_v22  ;;  %v3113_v43 = vmul.f32 %v3042_v48, %v3506_v1  ;;  %v1088_v41 = vmul.f32 1.442695, %v986_v39  ;;  %v3511_v37 = vld [vmem:[#allocation27_spill] sm:$0xff] }
 0x1fc   :  { %v1205_v56 = vadd.f32 %v3071_v19, %v1204_v2  ;;  %1696 = vmatpush3.msra.mxu1 %v1245_v35  ;;  %v3103_v55 = vpop.eup %1916  ;;  %1733 = vmatpush3.msra.mxu0 %v1260_v10  ;;  %1940 = vpow2.f32 %v1084_v34  ;;  %v1138_v35 = vmul.f32 1.442695, %v1011_v0  ;;  %v1242_v34 = vmul.f32 %v3042_v48, %v3507_v63 }
 0x1fd   :  { %1697 = vmatprep.subr.mxu1 %v3493_v45  ;;  %1734 = vmatprep.subr.mxu0 %v3493_v45  ;;  %v3121_v2 = vpop.eup %1918  ;;  %1942 = vpow2.f32 %v1134_v47  ;;  %v1090_v47 = vmul.f32 1.442695, %v987_v51  ;;  %v1092_v31 = vmul.f32 1.442695, %v988_v21  ;;  %v1098_v28 = vmul.f32 1.442695, %v991_v42 }
 0x1fe   :  { %v1206_v20 = vadd.f32 %v3086_v6, %v1205_v56  ;;  %1698 = vmatpush3.msra.mxu1 %v1244_v49  ;;  %1735 = vmatpush3.msra.mxu0 %v1259_v32  ;;  %v3508_v49 = vld [vmem:[#allocation31_spill] sm:$0xff]  ;;  %v3130_v39 = vpop.eup %1920  ;;  %1944 = vpow2.f32 %v1086_v27  ;;  %v1094_v56 = vmul.f32 1.442695, %v989_v52  ;;  %v3509_v52 = vld [vmem:[#allocation29_spill] sm:$0xff]  ;;  %v1100_v13 = vmul.f32 1.442695, %v992_v12 }
 0x1ff   :  { %1699 = vmatprep.subr.mxu1 %v3493_v45  ;;  %v1258_v18 = vmul.f32 %v3038_v59, %v3508_v49  ;;  %1736 = vmatprep.subr.mxu0 %v3493_v45  ;;  %v3138_v61 = vpop.eup %1922  ;;  %1946 = vpow2.f32 %v3050_v33  ;;  %v1102_v7 = vmul.f32 1.442695, %v993_v40  ;;  %v1104_v40 = vmul.f32 1.442695, %v994_v8 }
 0x200   :  { %v1207_v29 = vadd.f32 %v3103_v55, %v1206_v20  ;;  %1700 = vmatpush3.msra.mxu1 %v1243_v60  ;;  %v3141_v9 = vpop.eup %1924  ;;  %1948 = vpow2.f32 %v1088_v41  ;;  %v1106_v8 = vmul.f32 1.442695, %v995_v17  ;;  %v3518_v17 = vld [vmem:[#allocation9_spill] sm:$0xff] }
 0x201   :  { %1701 = vmatprep.subr.mxu1 %v3493_v45  ;;  %1737 = vmatpush3.msra.mxu0 %v1258_v18  ;;  %v3149_v51 = vpop.eup %1926  ;;  %1950 = vpow2.f32 %v1138_v35  ;;  %v3515_v18 = vld [vmem:[#allocation25_spill] sm:$0xff] }
 0x202   :  { %v1208_v10 = vadd.f32 %v3121_v2, %v1207_v29  ;;  %1702 = vmatpush3.msra.mxu1 %v1242_v34  ;;  %1738 = vmatprep.subr.mxu0 %v3493_v45  ;;  %v3151_v33 = vpop.eup %1928  ;;  %1952 = vpow2.f32 %v1090_v47  ;;  %v3513_v29 = vld [vmem:[#allocation26_spill] sm:$0xff] }
 0x203   :  { %1703 = vmatprep.subr.mxu1 %v3493_v45  ;;  %1739 = vmatpush3.msra.mxu0 %v1257_v3  ;;  %v3159_v24 = vpop.eup %1930  ;;  %1954 = vpow2.f32 %v1092_v31  ;;  %v1251_v41 = vmul.f32 %v3038_v59, %v3513_v29  ;;  %v3514_v34 = vld [vmem:[#allocation34_spill] sm:$0xff] }
 0x204   :  { %v1209_v0 = vadd.f32 %v3130_v39, %v1208_v10  ;;  %1704 = vmatpush3.msra.mxu1 %v1241_v36  ;;  %1740 = vmatprep.subr.mxu0 %v3493_v45  ;;  %v1096_v36 = vmul.f32 1.442695, %v990_v38  ;;  %v1182_v3 = vadd.f32 %v3159_v24, %v3151_v33  ;;  %1956 = vpow2.f32 %v1094_v56 }
 0x205   :  { %1705 = vmatprep.subr.mxu1 %v3493_v45  ;;  %1741 = vmatpush3.msra.mxu0 %v1256_v26  ;;  %v3169_v16 = vpop.eup %1932  ;;  %v1234_v49 = vmul.f32 %v3042_v48, %v3514_v34  ;;  %v1250_v10 = vmul.f32 %v3038_v59, %v3515_v18 }
 0x206   :  { %v1210_v27 = vadd.f32 %v3138_v61, %v1209_v0  ;;  %1706 = vmatpush3.msra.mxu1 %v1240_v44  ;;  %1742 = vmatprep.subr.mxu0 %v3493_v45  ;;  %v1254_v44 = vmul.f32 %v3038_v59, %v3509_v52  ;;  %v3173_v26 = vpop.eup %1934  ;;  %v1183_v38 = vadd.f32 %v3169_v16, %v1182_v3  ;;  %1958 = vpow2.f32 %v1096_v36 }
 0x207   :  { %1707 = vmatprep.subr.mxu1 %v3493_v45  ;;  %1743 = vmatpush3.msra.mxu0 %v1255_v15  ;;  %v1253_v15 = vmul.f32 %v3038_v59, %v3510_v25  ;;  %1960 = vpow2.f32 %v1098_v28  ;;  %v1232_v52 = vmul.f32 %v3042_v48, %v3518_v17 }
 0x208   :  { %v1211_v21 = vadd.f32 %v3141_v9, %v1210_v27  ;;  %1708 = vmatpush3.msra.mxu1 %v1239_v46  ;;  %1744 = vmatprep.subr.mxu0 %v3493_v45  ;;  %v3182_v46 = vpop.eup %1936  ;;  %1962 = vpow2.f32 %v1100_v13  ;;  %v3516_v27 = vld [vmem:[#allocation33_spill] sm:$0xff]  ;;  %v3520_v13 = vld [vmem:[#allocation6_spill] sm:$0xff] }
 0x209   :  { %1709 = vmatprep.subr.mxu1 %v3493_v45  ;;  %1745 = vmatpush3.msra.mxu0 %v1254_v44  ;;  %v3187_v20 = vpop.eup %1938  ;;  %v1184_v42 = vadd.f32 %v3182_v46, %v1183_v38  ;;  %1964 = vpow2.f32 %v1102_v7  ;;  %v1233_v56 = vmul.f32 %v3042_v48, %v3516_v27  ;;  %v3519_v44 = vld [vmem:[#allocation23_spill] sm:$0xff] }
 0x20a   :  { %v1212_v50 = vadd.f32 %v3149_v51, %v1211_v21  ;;  %1710 = vmatpush3.msra.mxu1 %v3101_v53  ;;  %1746 = vmatprep.subr.mxu0 %v3493_v45  ;;  %v3196_v60 = vpop.eup %1940  ;;  %v1252_v53 = vmul.f32 %v3038_v59, %v3511_v37  ;;  %v3517_v21 = vld [vmem:[#allocation24_spill] sm:$0xff]  ;;  %1966 = vpow2.f32 %v1104_v40 }
 0x20b   :  { %1711 = vmatprep.subr.mxu1 %v3493_v45  ;;  %1747 = vmatpush3.msra.mxu0 %v1253_v15  ;;  %v3201_v4 = vpop.eup %1942  ;;  %v1185_v12 = vadd.f32 %v3196_v60, %v1184_v42  ;;  %v1249_v36 = vmul.f32 %v3038_v59, %v3517_v21  ;;  %1968 = vpow2.f32 %v1106_v8 }
 0x20c   :  { %v1213_v14 = vadd.f32 %v3173_v26, %v1212_v50  ;;  %1712 = vmatpush3.msra.mxu1 %v3109_v54  ;;  %1748 = vmatprep.subr.mxu0 %v3493_v45  ;;  %v3210_v22 = vpop.eup %1944  ;;  %v3512_v54 = vld [vmem:[#allocation35_spill] sm:$0xff]  ;;  %v1248_v50 = vmul.f32 %v3038_v59, %v3519_v44 }
 0x20d   :  { %1713 = vmatprep.subr.mxu1 %v3493_v45  ;;  %1749 = vmatpush3.msra.mxu0 %v1252_v53  ;;  %v1235_v1 = vmul.f32 %v3042_v48, %v3512_v54  ;;  %v3217_v35 = vpop.eup %1946  ;;  %v1186_v63 = vadd.f32 %v3210_v22, %v1185_v12  ;;  %v3521_v48 = vld [vmem:[#allocation5_spill] sm:$0xff] }
 0x20e   :  { %v1214_v32 = vadd.f32 %v3187_v20, %v1213_v14  ;;  %1714 = vmatpush3.msra.mxu1 %v3113_v43  ;;  %1750 = vmatprep.subr.mxu0 %v3493_v45  ;;  %v3226_v43 = vpop.eup %1948 }
 0x20f   :  { %1715 = vmatprep.subr.mxu1 %v3493_v45  ;;  %1751 = vmatpush3.msra.mxu0 %v1251_v41  ;;  %v3232_v47 = vpop.eup %1950  ;;  %v1187_v0 = vadd.f32 %v3226_v43, %v1186_v63 }
 0x210   :  { %v1215_v30 = vadd.f32 %v3201_v4, %v1214_v32  ;;  %1716 = vmatpush3.msra.mxu1 %v1235_v1  ;;  %1752 = vmatprep.subr.mxu0 %v3493_v45  ;;  %v3241_v31 = vpop.eup %1952 }
 0x211   :  { %1717 = vmatprep.subr.mxu1 %v3493_v45  ;;  %1753 = vmatpush3.msra.mxu0 %v1250_v10  ;;  %v1188_v62 = vadd.f32 %v3241_v31, %v1187_v0  ;;  %v3251_v23 = vpop.eup %1954 }
 0x212   :  { %v1216_v5 = vadd.f32 %v3217_v35, %v1215_v30  ;;  %1718 = vmatpush3.msra.mxu1 %v1234_v49  ;;  %1754 = vmatprep.subr.mxu0 %v3493_v45  ;;  %v3260_v25 = vpop.eup %1956 }
 0x213   :  { %1719 = vmatprep.subr.mxu1 %v3493_v45  ;;  %1755 = vmatpush3.msra.mxu0 %v1249_v36  ;;  %v1189_v38 = vadd.f32 %v3251_v23, %v1188_v62  ;;  %v3265_v59 = vpop.eup %1958 }
 0x214   :  { %v1217_v3 = vadd.f32 %v3232_v47, %v1216_v5  ;;  %1720 = vmatpush3.msra.mxu1 %v1233_v56  ;;  %1756 = vmatprep.subr.mxu0 %v3493_v45  ;;  %v1961_v53 = vpop.eup %1960 }
 0x215   :  { %1721 = vmatprep.subr.mxu1 %v3493_v45  ;;  %1757 = vmatpush3.msra.mxu0 %v1248_v50  ;;  %v1190_v14 = vadd.f32 %v3260_v25, %v1189_v38  ;;  %v1963_v12 = vpop.eup %1962 }
 0x216   :  { %v1218_v28 = vrot.slane %v1217_v3, 4  ;;  %1722 = vmatpush3.msra.mxu1 %v1232_v52  ;;  %1759 = vmatmul.mubr.f32.vlgmr.msra.gmra.mxu0 %v3521_v48  ;;  %v1965_v29 = vpop.eup %1964 }
 0x217   :  { %1724 = vmatmul.mubr.f32.vlgmr.msra.gmra.mxu1 %v3520_v13  ;;  %1761 = vmatprep.subr.mxu1 %v3493_v45  ;;  %v1191_v37 = vadd.f32 %v3265_v59, %v1190_v14  ;;  %v1967_v40 = vpop.eup %1966 }
 0x218   :  { %v1219_v15 = vadd.f32 %v1218_v28, %v1217_v3  ;;  %1796 = vmatprep.subr.mxu0 %v3493_v45  ;;  %1793 = vmatprep.mubr.msk.f32.mxu1 %vm1999_vm14, %v3493_v45  ;;  %v1969_v49 = vpop.eup %1968 }
 0x219   :  { %1828 = vmatprep.mubr.msk.f32.mxu0 %vm1999_vm14, %v3493_v45  ;;  %v1192_v7 = vadd.f32 %v1961_v53, %v1191_v37 }
 0x21a   :  { %v1220_v42 = vrot.slane %v1219_v15, 2 }
 0x21b   :  { %v1193_v1 = vadd.f32 %v1963_v12, %v1192_v7 }
 0x21c   :  { %v1221_v32 = vadd.f32 %v1220_v42, %v1219_v15 }
 0x21d   :  { %v1194_v30 = vadd.f32 %v1965_v29, %v1193_v1 }
 0x21e   :  { %v1222_v54 = vrot.slane %v1221_v32, 1 }
 0x21f   :  { %v1195_v34 = vadd.f32 %v1967_v40, %v1194_v30 }
 0x220   :  { %v1223_v41 = vadd.f32 %v1222_v54, %v1221_v32 }
 0x221   :  { %v1196_v18 = vadd.f32 %v1969_v49, %v1195_v34 }
 0x222   :  { %v1227_v63 = vadd.f32 1e-16, %v1223_v41 }
 0x223   :  { %v1197_v10 = vrot.slane %v1196_v18, 4 }
 0x224   :  { %1970 = vrcp.f32 %v1227_v63 }
 0x225   :  { %v1198_v5 = vadd.f32 %v1197_v10, %v1196_v18 }
 0x227   :  { %v1199_v8 = vrot.slane %v1198_v5, 2 }
 0x229   :  { %v1200_v0 = vadd.f32 %v1199_v8, %v1198_v5 }
 0x22b   :  { %v1201_v27 = vrot.slane %v1200_v0, 1 }
 0x22d   :  { %v1202_v56 = vadd.f32 %v1201_v27, %v1200_v0 }
 0x22f   :  { %v1226_v36 = vadd.f32 1e-16, %v1202_v56 }
 0x231   :  { %v1971_v21 = vpop.eup %1970  ;;  %1972 = vrcp.f32 %v1226_v36 }
 0x232   :  { %v1295_v3 = vmul.f32 %v1971_v21, %v3232_v47  ;;  %v1294_v62 = vmul.f32 %v1971_v21, %v3217_v35  ;;  %v1289_v17 = vmul.f32 %v1971_v21, %v3141_v9  ;;  %v1288_v52 = vmul.f32 %v1971_v21, %v3138_v61 }
 0x233   :  { %v1287_v44 = vmul.f32 %v1971_v21, %v3130_v39  ;;  %v1286_v50 = vmul.f32 %v1971_v21, %v3121_v2  ;;  %v1285_v28 = vmul.f32 %v1971_v21, %v3103_v55  ;;  %v1284_v38 = vmul.f32 %v1971_v21, %v3086_v6 }
 0x234   :  { %1797 = vmatpush3.msra.mxu0 %v1295_v3  ;;  %v1283_v47 = vmul.f32 %v1971_v21, %v3071_v19  ;;  %v1282_v35 = vmul.f32 %v1971_v21, %v3058_v11  ;;  %v1293_v9 = vmul.f32 %v1971_v21, %v3201_v4  ;;  %v1281_v15 = vmul.f32 %v1971_v21, %v3048_v57 }
 0x235   :  { %1798 = vmatprep.subr.mxu0 %v3493_v45  ;;  %v1280_v61 = vmul.f32 %v1971_v21, %v3046_v58  ;;  %v1292_v2 = vmul.f32 %v1971_v21, %v3187_v20  ;;  %v1291_v6 = vmul.f32 %v1971_v21, %v3173_v26  ;;  %v1290_v11 = vmul.f32 %v1971_v21, %v3149_v51 }
 0x236   :  { %1799 = vmatpush3.msra.mxu0 %v1294_v62 }
 0x237   :  { %1800 = vmatprep.subr.mxu0 %v3493_v45 }
 0x238   :  { %1801 = vmatpush3.msra.mxu0 %v1293_v9 }
 0x239   :  { %1802 = vmatprep.subr.mxu0 %v3493_v45 }
 0x23a   :  { %1803 = vmatpush3.msra.mxu0 %v1292_v2 }
 0x23b   :  { %1804 = vmatprep.subr.mxu0 %v3493_v45 }
 0x23c   :  { %1805 = vmatpush3.msra.mxu0 %v1291_v6 }
 0x23d   :  { %1806 = vmatprep.subr.mxu0 %v3493_v45 }
 0x23e   :  { %1807 = vmatpush3.msra.mxu0 %v1290_v11  ;;  %v1973_v58 = vpop.eup %1972 }
 0x23f   :  { %1808 = vmatprep.subr.mxu0 %v3493_v45  ;;  %v1279_v57 = vmul.f32 %v1973_v58, %v1969_v49  ;;  %v1278_v19 = vmul.f32 %v1973_v58, %v1967_v40  ;;  %v1277_v55 = vmul.f32 %v1973_v58, %v1965_v29  ;;  %v1276_v39 = vmul.f32 %v1973_v58, %v1963_v12 }
 0x240   :  { %1809 = vmatpush3.msra.mxu0 %v1289_v17  ;;  %v1275_v26 = vmul.f32 %v1973_v58, %v1961_v53  ;;  %v1274_v20 = vmul.f32 %v1973_v58, %v3265_v59  ;;  %v1273_v4 = vmul.f32 %v1973_v58, %v3260_v25  ;;  %v1272_v51 = vmul.f32 %v1973_v58, %v3251_v23 }
 0x241   :  { %1810 = vmatprep.subr.mxu0 %v3493_v45  ;;  %1762 = vmatpush3.msra.mxu1 %v1279_v57  ;;  %v1271_v14 = vmul.f32 %v1973_v58, %v3241_v31  ;;  %v1270_v13 = vmul.f32 %v1973_v58, %v3226_v43  ;;  %v1269_v48 = vmul.f32 %v1973_v58, %v3210_v22 }
 0x242   :  { %1811 = vmatpush3.msra.mxu0 %v1288_v52  ;;  %1763 = vmatprep.subr.mxu1 %v3493_v45  ;;  %v1268_v59 = vmul.f32 %v1973_v58, %v3196_v60  ;;  %v1267_v25 = vmul.f32 %v1973_v58, %v3182_v46  ;;  %v1266_v23 = vmul.f32 %v1973_v58, %v3169_v16 }
 0x243   :  { %1812 = vmatprep.subr.mxu0 %v3493_v45  ;;  %1764 = vmatpush3.msra.mxu1 %v1278_v19  ;;  %v1265_v42 = vmul.f32 %v1973_v58, %v3159_v24  ;;  %v1264_v31 = vmul.f32 %v1973_v58, %v3151_v33  ;;  %v3522_v33 = vld [vmem:[#allocation7_spill] sm:$0xff]  ;;  %v3523_v24 = vld [vmem:[#allocation8_spill] sm:$0xff] }
 0x244   :  { %1813 = vmatpush3.msra.mxu0 %v1287_v44  ;;  %1765 = vmatprep.subr.mxu1 %v3493_v45 }
 0x245   :  { %1814 = vmatprep.subr.mxu0 %v3493_v45  ;;  %1766 = vmatpush3.msra.mxu1 %v1277_v55 }
 0x246   :  { %1815 = vmatpush3.msra.mxu0 %v1286_v50  ;;  %1767 = vmatprep.subr.mxu1 %v3493_v45 }
 0x247   :  { %1816 = vmatprep.subr.mxu0 %v3493_v45  ;;  %1768 = vmatpush3.msra.mxu1 %v1276_v39 }
 0x248   :  { %1817 = vmatpush3.msra.mxu0 %v1285_v28  ;;  %1769 = vmatprep.subr.mxu1 %v3493_v45 }
 0x249   :  { %1818 = vmatprep.subr.mxu0 %v3493_v45  ;;  %1770 = vmatpush3.msra.mxu1 %v1275_v26 }
 0x24a   :  { %1819 = vmatpush3.msra.mxu0 %v1284_v38  ;;  %1771 = vmatprep.subr.mxu1 %v3493_v45 }
 0x24b   :  { %1820 = vmatprep.subr.mxu0 %v3493_v45  ;;  %1772 = vmatpush3.msra.mxu1 %v1274_v20 }
 0x24c   :  { %1821 = vmatpush3.msra.mxu0 %v1283_v47  ;;  %1773 = vmatprep.subr.mxu1 %v3493_v45 }
 0x24d   :  { %1822 = vmatprep.subr.mxu0 %v3493_v45  ;;  %1774 = vmatpush3.msra.mxu1 %v1273_v4 }
 0x24e   :  { %1823 = vmatpush3.msra.mxu0 %v1282_v35  ;;  %1775 = vmatprep.subr.mxu1 %v3493_v45 }
 0x24f   :  { %1824 = vmatprep.subr.mxu0 %v3493_v45  ;;  %1776 = vmatpush3.msra.mxu1 %v1272_v51 }
 0x250   :  { %1825 = vmatpush3.msra.mxu0 %v1281_v15  ;;  %1777 = vmatprep.subr.mxu1 %v3493_v45 }
 0x251   :  { %1826 = vmatprep.subr.mxu0 %v3493_v45  ;;  %1778 = vmatpush3.msra.mxu1 %v1271_v14 }
 0x252   :  { %1827 = vmatpush3.msra.mxu0 %v1280_v61  ;;  %1779 = vmatprep.subr.mxu1 %v3493_v45 }
 0x253   :  { %1829 = vmatmul.mubr.f32.vlgmr.msra.gmra.mxu0 %v3522_v33  ;;  %1780 = vmatpush3.msra.mxu1 %v1270_v13 }
 0x254   :  { %1781 = vmatprep.subr.mxu1 %v3493_v45 }
 0x255   :  { %1782 = vmatpush3.msra.mxu1 %v1269_v48 }
 0x256   :  { %1783 = vmatprep.subr.mxu1 %v3493_v45 }
 0x257   :  { %1784 = vmatpush3.msra.mxu1 %v1268_v59 }
 0x258   :  { %1785 = vmatprep.subr.mxu1 %v3493_v45 }
 0x259   :  { %1786 = vmatpush3.msra.mxu1 %v1267_v25 }
 0x25a   :  { %1787 = vmatprep.subr.mxu1 %v3493_v45 }
 0x25b   :  { %1788 = vmatpush3.msra.mxu1 %v1266_v23 }
 0x25c   :  { %1789 = vmatprep.subr.mxu1 %v3493_v45 }
 0x25d   :  { %1790 = vmatpush3.msra.mxu1 %v1265_v42 }
 0x25e   :  { %1791 = vmatprep.subr.mxu1 %v3493_v45 }
 0x25f   :  { %1792 = vmatpush3.msra.mxu1 %v1264_v31 }
 0x260   :  { %1794 = vmatmul.mubr.f32.vlgmr.msra.gmra.mxu1 %v3523_v24 }
 0x2d6   :  { %v1432_v46 = vpop.f32.mrf.mxu0 }
 0x2d7   :  { %v1362_v16 = vpop.f32.mrf.mxu1  ;;  %1577 = vst [vmem:[#allocation2 + $0x8] sm:$0xff] %v1432_v46 }
 0x2d8   :  { %1576 = vst [vmem:[#allocation2] sm:$0xff] %v1362_v16  ;;  %v1760_v22 = vpop.f32.mrf.mxu0 }
 0x2d9   :  { %v1725_v60 = vpop.f32.mrf.mxu1 }
 0x313   :  { %v1572_v43 = vpop.f32.mrf.mxu0 }
 0x314   :  { %1579 = vst [vmem:[#allocation2 + $0x18] sm:$0xff] %v1572_v43 }
 0x315   :  { %v1830_v37 = vpop.f32.mrf.mxu0 }
 0x320   :  { %v1502_v53 = vpop.f32.mrf.mxu1 }
 0x321   :  { %1578 = vst [vmem:[#allocation2 + $0x10] sm:$0xff] %v1502_v53 }
 0x322   :  { %v1795_v32 = vpop.f32.mrf.mxu1 }
 0x323   :  { %1985 = shalt.err (!%p1982_p4)
}
 0x324   :  { %s2001_s9 = smov 128   ;;  %s2002_s10 = smov 8  }
 0x325   :  { %1591 = dma.vmem_to_hbm [thread:$0]  %s1586_s7, 512, %s3339_s3, [#allocation3], %s2001_s9, %s2001_s9, %s2002_s10  }
 0x326   :  { %1994 = dma.done.wait [#allocation3], 512  }
 0x327   :  { %1995 = vsyncadd [#allocation3], 4294966784 }
 0x328   :  { %1595 = vsyncpa [#allocation3], 1 }

</bundles_post_ra>
